<compile_context>
chip_gen: v5e
topology: v5e:2x2
jax: 0.10.0
libtpu: 0.0.40
codegen_flags: <defaults>
</compile_context>

<pallas_src>
import functools
import math

import jax
import jax.numpy as jnp
from jax.experimental import pallas as pl
from jax.experimental.pallas import tpu as pltpu


# ---------------------------------------------------------------------------
# Kernels
# ---------------------------------------------------------------------------

def _ln_linear_kernel(x_ref, a_ref, b_ref, w_ref, bias_ref, o_ref, *, eps, feat, relu):
    """Fused LayerNorm (torch-style: std ddof=1, eps added to std) + matmul (+ReLU)."""
    x = x_ref[...]                                        # (bm, din)
    mean = jnp.mean(x, axis=-1, keepdims=True)
    xc = x - mean
    var = jnp.sum(xc * xc, axis=-1, keepdims=True) / (feat - 1)
    xn = a_ref[...] * xc / (jnp.sqrt(var) + eps) + b_ref[...]
    y = jnp.dot(xn, w_ref[...], preferred_element_type=jnp.float32) + bias_ref[...]
    if relu:
        y = jnp.maximum(y, 0.0)
    o_ref[...] = y.astype(o_ref.dtype)


def _linear_kernel(x_ref, w_ref, b_ref, o_ref, *, relu):
    y = jnp.dot(x_ref[...], w_ref[...], preferred_element_type=jnp.float32)
    y = y + b_ref[...]
    if relu:
        y = jnp.maximum(y, 0.0)
    o_ref[...] = y.astype(o_ref.dtype)


def _linear_residual_kernel(x_ref, w_ref, b_ref, r_ref, o_ref):
    y = jnp.dot(x_ref[...], w_ref[...], preferred_element_type=jnp.float32)
    o_ref[...] = (y + b_ref[...] + r_ref[...]).astype(o_ref.dtype)


def _attention_kernel(q_ref, k_ref, v_ref, mask_ref, o_ref, *, scale):
    q = q_ref[...]                                        # (Sq, dk)
    k = k_ref[...]                                        # (Sk, dk)
    v = v_ref[...]                                        # (Sk, dk)
    mask = mask_ref[...]                                  # (Sq, Sk) int32
    scores = jnp.dot(q, k.T, preferred_element_type=jnp.float32) * scale
    scores = jnp.where(mask == 0, jnp.float32(-1e9), scores)
    scores = scores - jnp.max(scores, axis=-1, keepdims=True)
    p = jnp.exp(scores)
    p = p / jnp.sum(p, axis=-1, keepdims=True)
    o_ref[...] = jnp.dot(p, v, preferred_element_type=jnp.float32).astype(o_ref.dtype)


# ---------------------------------------------------------------------------
# pallas_call wrappers
# ---------------------------------------------------------------------------

def _row_block(n):
    for bm in (512, 256, 128, 64, 32, 16, 8):
        if n % bm == 0:
            return bm
    return n  # fall back to the full row extent (always legal)


def ln_linear(x2d, a2, b2, w, bias, *, relu=False, eps=1e-6):
    """y = (optional ReLU)( LN(x) @ w + bias )  with LN fused in-kernel."""
    n, din = x2d.shape
    dout = w.shape[1]
    bm = _row_block(n)
    cost = pl.CostEstimate(
        flops=int(2 * n * din * dout + 8 * n * din), transcendentals=0,
        bytes_accessed=int(4 * (n * din + din * dout + dout + 2 * din + n * dout)))
    return pl.pallas_call(
        functools.partial(_ln_linear_kernel, eps=eps, feat=din, relu=relu),
        grid_spec=pltpu.PrefetchScalarGridSpec(
            num_scalar_prefetch=0,
            grid=(n // bm,),
            in_specs=[
                pl.BlockSpec((bm, din), lambda i: (i, 0)),
                pl.BlockSpec((1, din), lambda i: (0, 0)),
                pl.BlockSpec((1, din), lambda i: (0, 0)),
                pl.BlockSpec((din, dout), lambda i: (0, 0)),
                pl.BlockSpec((1, dout), lambda i: (0, 0)),
            ],
            out_specs=pl.BlockSpec((bm, dout), lambda i: (i, 0)),
        ),
        out_shape=jax.ShapeDtypeStruct((n, dout), x2d.dtype),
        compiler_params=pltpu.CompilerParams(dimension_semantics=("parallel",)),
        cost_estimate=cost,
    )(x2d, a2.reshape(1, din), b2.reshape(1, din), w, bias.reshape(1, dout))


def linear(x2d, w, b, *, relu=False, residual=None):
    n, din = x2d.shape
    dout = w.shape[1]
    bm = _row_block(n)
    bytes_accessed = int(4 * (n * din + din * dout + dout + n * dout
                              + (n * dout if residual is not None else 0)))
    cost = pl.CostEstimate(flops=int(2 * n * din * dout), transcendentals=0,
                           bytes_accessed=bytes_accessed)
    if residual is None:
        kernel = functools.partial(_linear_kernel, relu=relu)
        in_specs = [
            pl.BlockSpec((bm, din), lambda i: (i, 0)),
            pl.BlockSpec((din, dout), lambda i: (0, 0)),
            pl.BlockSpec((1, dout), lambda i: (0, 0)),
        ]
        args = (x2d, w, b.reshape(1, dout))
    else:
        kernel = _linear_residual_kernel
        in_specs = [
            pl.BlockSpec((bm, din), lambda i: (i, 0)),
            pl.BlockSpec((din, dout), lambda i: (0, 0)),
            pl.BlockSpec((1, dout), lambda i: (0, 0)),
            pl.BlockSpec((bm, dout), lambda i: (i, 0)),
        ]
        args = (x2d, w, b.reshape(1, dout), residual)
    return pl.pallas_call(
        kernel,
        grid_spec=pltpu.PrefetchScalarGridSpec(
            num_scalar_prefetch=0,
            grid=(n // bm,),
            in_specs=in_specs,
            out_specs=pl.BlockSpec((bm, dout), lambda i: (i, 0)),
        ),
        out_shape=jax.ShapeDtypeStruct((n, dout), x2d.dtype),
        compiler_params=pltpu.CompilerParams(dimension_semantics=("parallel",)),
        cost_estimate=cost,
    )(*args)


def attention(q, k, v, mask):
    """q: (B, h, Sq, dk); k, v: (B, h, Sk, dk); mask: (B, Sq, Sk) int32 (0 = masked)."""
    B, h, Sq, dk = q.shape
    Sk = k.shape[2]
    scale = 1.0 / math.sqrt(dk)
    return pl.pallas_call(
        functools.partial(_attention_kernel, scale=scale),
        grid_spec=pltpu.PrefetchScalarGridSpec(
            num_scalar_prefetch=0,
            grid=(B, h),
            in_specs=[
                pl.BlockSpec((None, None, Sq, dk), lambda b, hh: (b, hh, 0, 0)),
                pl.BlockSpec((None, None, Sk, dk), lambda b, hh: (b, hh, 0, 0)),
                pl.BlockSpec((None, None, Sk, dk), lambda b, hh: (b, hh, 0, 0)),
                pl.BlockSpec((None, Sq, Sk), lambda b, hh: (b, 0, 0)),  # broadcast over heads
            ],
            out_specs=pl.BlockSpec((None, None, Sq, dk), lambda b, hh: (b, hh, 0, 0)),
        ),
        out_shape=jax.ShapeDtypeStruct((B, h, Sq, dk), q.dtype),
        compiler_params=pltpu.CompilerParams(
            dimension_semantics=("parallel", "parallel")),
        cost_estimate=pl.CostEstimate(
            flops=int(4 * B * h * Sq * Sk * dk),
            transcendentals=int(B * h * Sq * Sk),
            bytes_accessed=int(4 * B * h * (Sq * dk + 2 * Sk * dk + Sq * Sk + Sq * dk))),
    )(q, k, v, mask)


# ---------------------------------------------------------------------------
# DecoderLayer forward
# ---------------------------------------------------------------------------

def _self_attention_sublayer(x, ln_a, ln_b, p, h, tgt_mask):
    """x + self_attn(LN(x), LN(x), LN(x), tgt_mask) — LN + fused QKV matmul."""
    B, S, d = x.shape
    dk = d // h
    wqkv = jnp.concatenate([p["wq"], p["wk"], p["wv"]], axis=1)   # (d, 3d)
    bqkv = jnp.concatenate([p["bq"], p["bk"], p["bv"]], axis=0)   # (3d,)
    qkv = ln_linear(x.reshape(B * S, d), ln_a, ln_b, wqkv, bqkv)  # (B*S, 3d)
    qkv = qkv.reshape(B, S, 3, h, dk).transpose(2, 0, 3, 1, 4)    # (3, B, h, S, dk)
    q4, k4, v4 = qkv[0], qkv[1], qkv[2]
    ctx = attention(q4, k4, v4, tgt_mask)                         # (B, h, S, dk)
    ctx2 = ctx.transpose(0, 2, 1, 3).reshape(B * S, d)
    out = linear(ctx2, p["wo"], p["bo"], residual=x.reshape(B * S, d))
    return out.reshape(B, S, d)


def _cross_attention_sublayer(x, memory, ln_a, ln_b, p, h, src_mask):
    """x + src_attn(LN(x), memory, memory, src_mask) — LN fused into Q proj, KV fused."""
    B, St, d = x.shape
    Ss = memory.shape[1]
    dk = d // h
    q2 = ln_linear(x.reshape(B * St, d), ln_a, ln_b, p["wq"], p["bq"])    # (B*St, d)
    wkv = jnp.concatenate([p["wk"], p["wv"]], axis=1)                     # (d, 2d)
    bkv = jnp.concatenate([p["bk"], p["bv"]], axis=0)                     # (2d,)
    kv = linear(memory.reshape(B * Ss, d), wkv, bkv)                      # (B*Ss, 2d)
    q4 = q2.reshape(B, St, h, dk).transpose(0, 2, 1, 3)                   # (B, h, St, dk)
    kv = kv.reshape(B, Ss, 2, h, dk).transpose(2, 0, 3, 1, 4)             # (2, B, h, Ss, dk)
    k4, v4 = kv[0], kv[1]
    ctx = attention(q4, k4, v4, src_mask)                                 # (B, h, St, dk)
    ctx2 = ctx.transpose(0, 2, 1, 3).reshape(B * St, d)
    out = linear(ctx2, p["wo"], p["bo"], residual=x.reshape(B * St, d))
    return out.reshape(B, St, d)


def _ffn_sublayer(x, ln_a, ln_b, w1, b1, w2, b2):
    """x + W2(relu(W1(LN(x)))) — LN+W1+ReLU fused, W2+residual fused."""
    B, S, d = x.shape
    x2 = x.reshape(B * S, d)
    hdn = ln_linear(x2, ln_a, ln_b, w1, b1, relu=True)
    out = linear(hdn, w2, b2, residual=x2)
    return out.reshape(B, S, d)


def decoder_layer_forward(x, memory, source_mask, target_mask, params, h):
    B, St, d = x.shape
    Ss = memory.shape[1]
    tgt_mask = jnp.broadcast_to(target_mask.astype(jnp.int32), (B, St, St))
    src_mask = jnp.broadcast_to(source_mask.astype(jnp.int32), (B, St, Ss))

    x = _self_attention_sublayer(x, params["ln0_a"], params["ln0_b"],
                                 params["self_attn"], h, tgt_mask)
    x = _cross_attention_sublayer(x, memory, params["ln1_a"], params["ln1_b"],
                                  params["src_attn"], h, src_mask)
    x = _ffn_sublayer(x, params["ln2_a"], params["ln2_b"],
                      params["ff_w1"], params["ff_b1"],
                      params["ff_w2"], params["ff_b2"])
    return x


# ---------------------------------------------------------------------------
# Pure-JAX reference (mirrors the PyTorch module, dropout = identity)
# ---------------------------------------------------------------------------

def _ref_layernorm(x, a, b, eps=1e-6):
    mean = jnp.mean(x, axis=-1, keepdims=True)
    var = jnp.sum((x - mean) ** 2, axis=-1, keepdims=True) / (x.shape[-1] - 1)
    return a * (x - mean) / (jnp.sqrt(var) + eps) + b


def _ref_mha(q_in, kv_in, mask, p, h):
    B, Sq, d = q_in.shape
    Sk = kv_in.shape[1]
    dk = d // h
    q = (q_in @ p["wq"] + p["bq"]).reshape(B, Sq, h, dk).transpose(0, 2, 1, 3)
    k = (kv_in @ p["wk"] + p["bk"]).reshape(B, Sk, h, dk).transpose(0, 2, 1, 3)
    v = (kv_in @ p["wv"] + p["bv"]).reshape(B, Sk, h, dk).transpose(0, 2, 1, 3)
    scores = jnp.einsum("bhqd,bhkd->bhqk", q, k) / math.sqrt(dk)
    scores = jnp.where(mask[:, None, :, :] == 0, -1e9, scores)
    pattn = jax.nn.softmax(scores, axis=-1)
    ctx = jnp.einsum("bhqk,bhkd->bhqd", pattn, v).transpose(0, 2, 1, 3).reshape(B, Sq, d)
    return ctx @ p["wo"] + p["bo"]


def _ref_decoder_layer(x, memory, src_mask, tgt_mask, params, h):
    xn = _ref_layernorm(x, params["ln0_a"], params["ln0_b"])
    x = x + _ref_mha(xn, xn, tgt_mask, params["self_attn"], h)
    xn = _ref_layernorm(x, params["ln1_a"], params["ln1_b"])
    x = x + _ref_mha(xn, memory, src_mask, params["src_attn"], h)
    xn = _ref_layernorm(x, params["ln2_a"], params["ln2_b"])
    ff = jnp.maximum(xn @ params["ff_w1"] + params["ff_b1"], 0.0) @ params["ff_w2"] + params["ff_b2"]
    return x + ff


# ---------------------------------------------------------------------------
# Test driver
# ---------------------------------------------------------------------------

if __name__ == "__main__":
    B, S_tgt, S_src = 2, 8, 8
    d_model, n_heads, d_ff = 32, 4, 64

    key = jax.random.PRNGKey(0)
    ks = jax.random.split(key, 20)

    def w(k, shape, s=0.1):
        return jax.random.normal(k, shape, dtype=jnp.float32) * s

    params = {
        "ln0_a": jnp.ones((d_model,), jnp.float32), "ln0_b": jnp.zeros((d_model,), jnp.float32),
        "ln1_a": jnp.ones((d_model,), jnp.float32), "ln1_b": jnp.zeros((d_model,), jnp.float32),
        "ln2_a": jnp.ones((d_model,), jnp.float32), "ln2_b": jnp.zeros((d_model,), jnp.float32),
        "self_attn": {
            "wq": w(ks[0], (d_model, d_model)), "bq": w(ks[1], (d_model,)),
            "wk": w(ks[2], (d_model, d_model)), "bk": w(ks[3], (d_model,)),
            "wv": w(ks[4], (d_model, d_model)), "bv": w(ks[5], (d_model,)),
            "wo": w(ks[6], (d_model, d_model)), "bo": w(ks[7], (d_model,)),
        },
        "src_attn": {
            "wq": w(ks[8], (d_model, d_model)), "bq": w(ks[9], (d_model,)),
            "wk": w(ks[10], (d_model, d_model)), "bk": w(ks[11], (d_model,)),
            "wv": w(ks[12], (d_model, d_model)), "bv": w(ks[13], (d_model,)),
            "wo": w(ks[14], (d_model, d_model)), "bo": w(ks[15], (d_model,)),
        },
        "ff_w1": w(ks[16], (d_model, d_ff)), "ff_b1": w(ks[17], (d_ff,)),
        "ff_w2": w(ks[18], (d_ff, d_model)), "ff_b2": w(ks[19], (d_model,)),
    }

    x = jax.random.normal(jax.random.fold_in(key, 100), (B, S_tgt, d_model), jnp.float32)
    memory = jax.random.normal(jax.random.fold_in(key, 101), (B, S_src, d_model), jnp.float32)
    # Causal target mask (B, S_tgt, S_tgt) and all-ones source mask (B, 1, S_src).
    target_mask = jnp.broadcast_to(
        jnp.tril(jnp.ones((S_tgt, S_tgt), jnp.int32))[None, :, :], (B, S_tgt, S_tgt))
    source_mask = jnp.ones((B, 1, S_src), jnp.int32)

    fwd = jax.jit(decoder_layer_forward, static_argnums=(5,))
    out = fwd(x, memory, source_mask, target_mask, params, n_heads)
    out = jax.block_until_ready(out)

    ref_src = jnp.broadcast_to(source_mask, (B, S_tgt, S_src))
    ref = _ref_decoder_layer(x, memory, ref_src, target_mask, params, n_heads)

    assert out.shape == (B, S_tgt, d_model)
    max_err = float(jnp.max(jnp.abs(out - ref)))
    assert jnp.allclose(out, ref, atol=1e-3, rtol=1e-3), f"max abs err = {max_err}"

    print("KERNEL_OK")
</pallas_src>

<mosaic_0001>
module attributes {stable_mosaic.version = 11 : i64} {
  func.func @_linear_residual_kernel(%arg0: i32, %arg1: memref<16x32xf32, #tpu.memory_space<vmem>>, %arg2: memref<32x32xf32, #tpu.memory_space<vmem>>, %arg3: memref<1x32xf32, #tpu.memory_space<vmem>>, %arg4: memref<16x32xf32, #tpu.memory_space<vmem>>, %arg5: memref<16x32xf32, #tpu.memory_space<vmem>>) attributes {dimension_semantics = [#tpu.dimension_semantics<parallel>], iteration_bounds = array<i64: 1>, scalar_prefetch = 0 : i64, scratch_operands = 0 : i64, tpu.core_type = #tpu.core_type<tc>, window_params = [{transform_indices = @transform_0, window_bounds = array<i64: 16, 32>}, {pipeline_mode = #tpu.pipeline_mode<synchronous>, transform_indices = @transform_1, window_bounds = array<i64: 32, 32>}, {pipeline_mode = #tpu.pipeline_mode<synchronous>, transform_indices = @transform_2, window_bounds = array<i64: 1, 32>}, {transform_indices = @transform_3, window_bounds = array<i64: 16, 32>}, {transform_indices = @transform_4, window_bounds = array<i64: 16, 32>}]} {
    %c0 = arith.constant 0 : index
    %c0_0 = arith.constant 0 : index
    %0 = vector.load %arg1[%c0, %c0_0] : memref<16x32xf32, #tpu.memory_space<vmem>>, vector<16x32xf32>
    %c0_1 = arith.constant 0 : index
    %c0_2 = arith.constant 0 : index
    %1 = vector.load %arg2[%c0_1, %c0_2] : memref<32x32xf32, #tpu.memory_space<vmem>>, vector<32x32xf32>
    %cst = arith.constant dense<0.000000e+00> : vector<16x32xf32>
    %2 = tpu.matmul %0, %1, %cst {dimension_numbers = #tpu.dot_dimension_numbers<[1], [0], [0], [1], [0, 0, 1, 1], [], []>} : vector<16x32xf32>, vector<32x32xf32>, vector<16x32xf32> -> vector<16x32xf32>
    %c0_3 = arith.constant 0 : index
    %c0_4 = arith.constant 0 : index
    %3 = vector.load %arg3[%c0_3, %c0_4] : memref<1x32xf32, #tpu.memory_space<vmem>>, vector<1x32xf32>
    %4 = vector.broadcast %3 : vector<1x32xf32> to vector<16x32xf32>
    %5 = arith.addf %2, %4 : vector<16x32xf32>
    %c0_5 = arith.constant 0 : index
    %c0_6 = arith.constant 0 : index
    %6 = vector.load %arg4[%c0_5, %c0_6] : memref<16x32xf32, #tpu.memory_space<vmem>>, vector<16x32xf32>
    %7 = arith.addf %5, %6 : vector<16x32xf32>
    %c0_7 = arith.constant 0 : index
    %c0_8 = arith.constant 0 : index
    %8 = vector.load %arg5[%c0_7, %c0_8] : memref<16x32xf32, #tpu.memory_space<vmem>>, vector<16x32xf32>
    tpu.vector_store %arg5[%c0_7, %c0_8], %7 {strides = array<i32>} : memref<16x32xf32, #tpu.memory_space<vmem>>, vector<16x32xf32>,
    return
  }
  func.func @transform_0(%arg0: i32) -> (i32, i32) {
    %c0_i32 = arith.constant 0 : i32
    %c0_i32_0 = arith.constant 0 : i32
    return %arg0, %c0_i32 : i32, i32
  }
  func.func @transform_1(%arg0: i32) -> (i32, i32) {
    %c0_i32 = arith.constant 0 : i32
    %c0_i32_0 = arith.constant 0 : i32
    %c0_i32_1 = arith.constant 0 : i32
    return %c0_i32, %c0_i32_0 : i32, i32
  }
  func.func @transform_2(%arg0: i32) -> (i32, i32) {
    %c0_i32 = arith.constant 0 : i32
    %c0_i32_0 = arith.constant 0 : i32
    %c0_i32_1 = arith.constant 0 : i32
    return %c0_i32, %c0_i32_0 : i32, i32
  }
  func.func @transform_3(%arg0: i32) -> (i32, i32) {
    %c0_i32 = arith.constant 0 : i32
    %c0_i32_0 = arith.constant 0 : i32
    return %arg0, %c0_i32 : i32, i32
  }
  func.func @transform_4(%arg0: i32) -> (i32, i32) {
    %c0_i32 = arith.constant 0 : i32
    %c0_i32_0 = arith.constant 0 : i32
    return %arg0, %c0_i32 : i32, i32
  }
}

module attributes {stable_mosaic.version = 11 : i64} {
  func.func @_ln_linear_kernel(%arg0: i32, %arg1: memref<16x32xf32, #tpu.memory_space<vmem>>, %arg2: memref<1x32xf32, #tpu.memory_space<vmem>>, %arg3: memref<1x32xf32, #tpu.memory_space<vmem>>, %arg4: memref<32x96xf32, #tpu.memory_space<vmem>>, %arg5: memref<1x96xf32, #tpu.memory_space<vmem>>, %arg6: memref<16x96xf32, #tpu.memory_space<vmem>>) attributes {dimension_semantics = [#tpu.dimension_semantics<parallel>], iteration_bounds = array<i64: 1>, scalar_prefetch = 0 : i64, scratch_operands = 0 : i64, tpu.core_type = #tpu.core_type<tc>, window_params = [{transform_indices = @transform_0, window_bounds = array<i64: 16, 32>}, {pipeline_mode = #tpu.pipeline_mode<synchronous>, transform_indices = @transform_1, window_bounds = array<i64: 1, 32>}, {pipeline_mode = #tpu.pipeline_mode<synchronous>, transform_indices = @transform_2, window_bounds = array<i64: 1, 32>}, {pipeline_mode = #tpu.pipeline_mode<synchronous>, transform_indices = @transform_3, window_bounds = array<i64: 32, 96>}, {pipeline_mode = #tpu.pipeline_mode<synchronous>, transform_indices = @transform_4, window_bounds = array<i64: 1, 96>}, {transform_indices = @transform_5, window_bounds = array<i64: 16, 96>}]} {
    %c0 = arith.constant 0 : index
    %c0_0 = arith.constant 0 : index
    %0 = vector.load %arg1[%c0, %c0_0] : memref<16x32xf32, #tpu.memory_space<vmem>>, vector<16x32xf32>
    %cst = arith.constant dense<0.000000e+00> : vector<16xf32>
    %1 = vector.multi_reduction <add>, %0, %cst [1] : vector<16x32xf32> to vector<16xf32>
    %2 = vector.shape_cast %1 : vector<16xf32> to vector<16x1xf32>
    %cst_1 = arith.constant 3.200000e+01 : f32
    %3 = vector.broadcast %cst_1 : f32 to vector<16x1xf32>
    %4 = arith.divf %2, %3 : vector<16x1xf32>
    %5 = vector.broadcast %4 : vector<16x1xf32> to vector<16x32xf32>
    %6 = arith.subf %0, %5 : vector<16x32xf32>
    %7 = arith.mulf %6, %6 : vector<16x32xf32>
    %cst_2 = arith.constant dense<0.000000e+00> : vector<16xf32>
    %8 = vector.multi_reduction <add>, %7, %cst_2 [1] : vector<16x32xf32> to vector<16xf32>
    %9 = vector.shape_cast %8 : vector<16xf32> to vector<16x1xf32>
    %cst_3 = arith.constant 3.100000e+01 : f32
    %10 = vector.broadcast %cst_3 : f32 to vector<16x1xf32>
    %11 = arith.divf %9, %10 : vector<16x1xf32>
    %c0_4 = arith.constant 0 : index
    %c0_5 = arith.constant 0 : index
    %12 = vector.load %arg2[%c0_4, %c0_5] : memref<1x32xf32, #tpu.memory_space<vmem>>, vector<1x32xf32>
    %13 = vector.broadcast %12 : vector<1x32xf32> to vector<16x32xf32>
    %14 = arith.mulf %13, %6 : vector<16x32xf32>
    %15 = math.sqrt %11 : vector<16x1xf32>
    %cst_6 = arith.constant 9.99999997E-7 : f32
    %16 = vector.broadcast %cst_6 : f32 to vector<16x1xf32>
    %17 = arith.addf %15, %16 : vector<16x1xf32>
    %18 = vector.broadcast %17 : vector<16x1xf32> to vector<16x32xf32>
    %19 = arith.divf %14, %18 : vector<16x32xf32>
    %c0_7 = arith.constant 0 : index
    %c0_8 = arith.constant 0 : index
    %20 = vector.load %arg3[%c0_7, %c0_8] : memref<1x32xf32, #tpu.memory_space<vmem>>, vector<1x32xf32>
    %21 = vector.broadcast %20 : vector<1x32xf32> to vector<16x32xf32>
    %22 = arith.addf %19, %21 : vector<16x32xf32>
    %c0_9 = arith.constant 0 : index
    %c0_10 = arith.constant 0 : index
    %23 = vector.load %arg4[%c0_9, %c0_10] : memref<32x96xf32, #tpu.memory_space<vmem>>, vector<32x96xf32>
    %cst_11 = arith.constant dense<0.000000e+00> : vector<16x96xf32>
    %24 = tpu.matmul %22, %23, %cst_11 {dimension_numbers = #tpu.dot_dimension_numbers<[1], [0], [0], [1], [0, 0, 1, 1], [], []>} : vector<16x32xf32>, vector<32x96xf32>, vector<16x96xf32> -> vector<16x96xf32>
    %c0_12 = arith.constant 0 : index
    %c0_13 = arith.constant 0 : index
    %25 = vector.load %arg5[%c0_12, %c0_13] : memref<1x96xf32, #tpu.memory_space<vmem>>, vector<1x96xf32>
    %26 = vector.broadcast %25 : vector<1x96xf32> to vector<16x96xf32>
    %27 = arith.addf %24, %26 : vector<16x96xf32>
    %c0_14 = arith.constant 0 : index
    %c0_15 = arith.constant 0 : index
    %28 = vector.load %arg6[%c0_14, %c0_15] : memref<16x96xf32, #tpu.memory_space<vmem>>, vector<16x96xf32>
    tpu.vector_store %arg6[%c0_14, %c0_15], %27 {strides = array<i32>} : memref<16x96xf32, #tpu.memory_space<vmem>>, vector<16x96xf32>,
    return
  }
  func.func @transform_0(%arg0: i32) -> (i32, i32) {
    %c0_i32 = arith.constant 0 : i32
    %c0_i32_0 = arith.constant 0 : i32
    return %arg0, %c0_i32 : i32, i32
  }
  func.func @transform_1(%arg0: i32) -> (i32, i32) {
    %c0_i32 = arith.constant 0 : i32
    %c0_i32_0 = arith.constant 0 : i32
    %c0_i32_1 = arith.constant 0 : i32
    return %c0_i32, %c0_i32_0 : i32, i32
  }
  func.func @transform_2(%arg0: i32) -> (i32, i32) {
    %c0_i32 = arith.constant 0 : i32
    %c0_i32_0 = arith.constant 0 : i32
    %c0_i32_1 = arith.constant 0 : i32
    return %c0_i32, %c0_i32_0 : i32, i32
  }
  func.func @transform_3(%arg0: i32) -> (i32, i32) {
    %c0_i32 = arith.constant 0 : i32
    %c0_i32_0 = arith.constant 0 : i32
    %c0_i32_1 = arith.constant 0 : i32
    return %c0_i32, %c0_i32_0 : i32, i32
  }
  func.func @transform_4(%arg0: i32) -> (i32, i32) {
    %c0_i32 = arith.constant 0 : i32
    %c0_i32_0 = arith.constant 0 : i32
    %c0_i32_1 = arith.constant 0 : i32
    return %c0_i32, %c0_i32_0 : i32, i32
  }
  func.func @transform_5(%arg0: i32) -> (i32, i32) {
    %c0_i32 = arith.constant 0 : i32
    %c0_i32_0 = arith.constant 0 : i32
    return %arg0, %c0_i32 : i32, i32
  }
}

module attributes {stable_mosaic.version = 11 : i64} {
  func.func @_attention_kernel(%arg0: i32, %arg1: i32, %arg2: memref<1x1x8x8xf32, #tpu.memory_space<vmem>>, %arg3: memref<1x1x8x8xf32, #tpu.memory_space<vmem>>, %arg4: memref<1x1x8x8xf32, #tpu.memory_space<vmem>>, %arg5: memref<1x8x8xi32, #tpu.memory_space<vmem>>, %arg6: memref<1x1x8x8xf32, #tpu.memory_space<vmem>>) attributes {dimension_semantics = [#tpu.dimension_semantics<parallel>, #tpu.dimension_semantics<parallel>], iteration_bounds = array<i64: 2, 4>, scalar_prefetch = 0 : i64, scratch_operands = 0 : i64, tpu.core_type = #tpu.core_type<tc>, window_params = [{transform_indices = @transform_0, window_bounds = array<i64: 1, 1, 8, 8>}, {transform_indices = @transform_1, window_bounds = array<i64: 1, 1, 8, 8>}, {transform_indices = @transform_2, window_bounds = array<i64: 1, 1, 8, 8>}, {transform_indices = @transform_3, window_bounds = array<i64: 1, 8, 8>}, {transform_indices = @transform_4, window_bounds = array<i64: 1, 1, 8, 8>}]} {
    %c0 = arith.constant 0 : index
    %c0_0 = arith.constant 0 : index
    %c0_1 = arith.constant 0 : index
    %c0_2 = arith.constant 0 : index
    %0 = vector.load %arg2[%c0, %c0_0, %c0_1, %c0_2] : memref<1x1x8x8xf32, #tpu.memory_space<vmem>>, vector<1x1x8x8xf32>
    %1 = vector.shape_cast %0 : vector<1x1x8x8xf32> to vector<8x8xf32>
    %c0_3 = arith.constant 0 : index
    %c0_4 = arith.constant 0 : index
    %c0_5 = arith.constant 0 : index
    %c0_6 = arith.constant 0 : index
    %2 = vector.load %arg3[%c0_3, %c0_4, %c0_5, %c0_6] : memref<1x1x8x8xf32, #tpu.memory_space<vmem>>, vector<1x1x8x8xf32>
    %3 = vector.shape_cast %2 : vector<1x1x8x8xf32> to vector<8x8xf32>
    %c0_7 = arith.constant 0 : index
    %c0_8 = arith.constant 0 : index
    %c0_9 = arith.constant 0 : index
    %c0_10 = arith.constant 0 : index
    %4 = vector.load %arg4[%c0_7, %c0_8, %c0_9, %c0_10] : memref<1x1x8x8xf32, #tpu.memory_space<vmem>>, vector<1x1x8x8xf32>
    %5 = vector.shape_cast %4 : vector<1x1x8x8xf32> to vector<8x8xf32>
    %c0_11 = arith.constant 0 : index
    %c0_12 = arith.constant 0 : index
    %c0_13 = arith.constant 0 : index
    %6 = vector.load %arg5[%c0_11, %c0_12, %c0_13] : memref<1x8x8xi32, #tpu.memory_space<vmem>>, vector<1x8x8xi32>
    %7 = vector.shape_cast %6 : vector<1x8x8xi32> to vector<8x8xi32>
    %8 = tpu.transpose %3, [1, 0] : vector<8x8xf32> -> vector<8x8xf32>
    %cst = arith.constant dense<0.000000e+00> : vector<8x8xf32>
    %9 = tpu.matmul %1, %8, %cst {dimension_numbers = #tpu.dot_dimension_numbers<[1], [0], [0], [1], [0, 0, 1, 1], [], []>} : vector<8x8xf32>, vector<8x8xf32>, vector<8x8xf32> -> vector<8x8xf32>
    %cst_14 = arith.constant 0.353553385 : f32
    %10 = vector.broadcast %cst_14 : f32 to vector<8x8xf32>
    %11 = arith.mulf %9, %10 : vector<8x8xf32>
    %c0_i32 = arith.constant 0 : i32
    %12 = vector.broadcast %c0_i32 : i32 to vector<8x8xi32>
    %13 = arith.cmpi eq, %7, %12 : vector<8x8xi32>
    %cst_15 = arith.constant -1.000000e+09 : f32
    %14 = vector.broadcast %cst_15 : f32 to vector<8x8xf32>
    %15 = arith.select %13, %14, %11 : vector<8x8xi1>, vector<8x8xf32>
    %cst_16 = arith.constant dense<0xFF800000> : vector<8xf32>
    %16 = vector.multi_reduction <maximumf>, %15, %cst_16 [1] : vector<8x8xf32> to vector<8xf32>
    %17 = vector.shape_cast %16 : vector<8xf32> to vector<8x1xf32>
    %18 = vector.broadcast %17 : vector<8x1xf32> to vector<8x8xf32>
    %19 = arith.subf %15, %18 : vector<8x8xf32>
    %20 = math.exp %19 : vector<8x8xf32>
    %cst_17 = arith.constant dense<0.000000e+00> : vector<8xf32>
    %21 = vector.multi_reduction <add>, %20, %cst_17 [1] : vector<8x8xf32> to vector<8xf32>
    %22 = vector.shape_cast %21 : vector<8xf32> to vector<8x1xf32>
    %23 = vector.broadcast %22 : vector<8x1xf32> to vector<8x8xf32>
    %24 = arith.divf %20, %23 : vector<8x8xf32>
    %cst_18 = arith.constant dense<0.000000e+00> : vector<8x8xf32>
    %25 = tpu.matmul %24, %5, %cst_18 {dimension_numbers = #tpu.dot_dimension_numbers<[1], [0], [0], [1], [0, 0, 1, 1], [], []>} : vector<8x8xf32>, vector<8x8xf32>, vector<8x8xf32> -> vector<8x8xf32>
    %c0_19 = arith.constant 0 : index
    %c0_20 = arith.constant 0 : index
    %c0_21 = arith.constant 0 : index
    %c0_22 = arith.constant 0 : index
    %26 = vector.load %arg6[%c0_19, %c0_20, %c0_21, %c0_22] : memref<1x1x8x8xf32, #tpu.memory_space<vmem>>, vector<1x1x8x8xf32>
    %27 = vector.shape_cast %26 : vector<1x1x8x8xf32> to vector<8x8xf32>
    %28 = vector.shape_cast %25 : vector<8x8xf32> to vector<1x1x8x8xf32>
    tpu.vector_store %arg6[%c0_19, %c0_20, %c0_21, %c0_22], %28 {strides = array<i32>} : memref<1x1x8x8xf32, #tpu.memory_space<vmem>>, vector<1x1x8x8xf32>,
    return
  }
  func.func @transform_0(%arg0: i32, %arg1: i32) -> (i32, i32, i32, i32) {
    %c0_i32 = arith.constant 0 : i32
    %c0_i32_0 = arith.constant 0 : i32
    %c0_i32_1 = arith.constant 0 : i32
    return %arg0, %arg1, %c0_i32, %c0_i32_0 : i32, i32, i32, i32
  }
  func.func @transform_1(%arg0: i32, %arg1: i32) -> (i32, i32, i32, i32) {
    %c0_i32 = arith.constant 0 : i32
    %c0_i32_0 = arith.constant 0 : i32
    %c0_i32_1 = arith.constant 0 : i32
    return %arg0, %arg1, %c0_i32, %c0_i32_0 : i32, i32, i32, i32
  }
  func.func @transform_2(%arg0: i32, %arg1: i32) -> (i32, i32, i32, i32) {
    %c0_i32 = arith.constant 0 : i32
    %c0_i32_0 = arith.constant 0 : i32
    %c0_i32_1 = arith.constant 0 : i32
    return %arg0, %arg1, %c0_i32, %c0_i32_0 : i32, i32, i32, i32
  }
  func.func @transform_3(%arg0: i32, %arg1: i32) -> (i32, i32, i32) {
    %c0_i32 = arith.constant 0 : i32
    %c0_i32_0 = arith.constant 0 : i32
    %c0_i32_1 = arith.constant 0 : i32
    return %arg0, %c0_i32, %c0_i32_0 : i32, i32, i32
  }
  func.func @transform_4(%arg0: i32, %arg1: i32) -> (i32, i32, i32, i32) {
    %c0_i32 = arith.constant 0 : i32
    %c0_i32_0 = arith.constant 0 : i32
    %c0_i32_1 = arith.constant 0 : i32
    return %arg0, %arg1, %c0_i32, %c0_i32_0 : i32, i32, i32, i32
  }
}

module attributes {stable_mosaic.version = 11 : i64} {
  func.func @_ln_linear_kernel(%arg0: i32, %arg1: memref<16x32xf32, #tpu.memory_space<vmem>>, %arg2: memref<1x32xf32, #tpu.memory_space<vmem>>, %arg3: memref<1x32xf32, #tpu.memory_space<vmem>>, %arg4: memref<32x32xf32, #tpu.memory_space<vmem>>, %arg5: memref<1x32xf32, #tpu.memory_space<vmem>>, %arg6: memref<16x32xf32, #tpu.memory_space<vmem>>) attributes {dimension_semantics = [#tpu.dimension_semantics<parallel>], iteration_bounds = array<i64: 1>, scalar_prefetch = 0 : i64, scratch_operands = 0 : i64, tpu.core_type = #tpu.core_type<tc>, window_params = [{transform_indices = @transform_0, window_bounds = array<i64: 16, 32>}, {pipeline_mode = #tpu.pipeline_mode<synchronous>, transform_indices = @transform_1, window_bounds = array<i64: 1, 32>}, {pipeline_mode = #tpu.pipeline_mode<synchronous>, transform_indices = @transform_2, window_bounds = array<i64: 1, 32>}, {pipeline_mode = #tpu.pipeline_mode<synchronous>, transform_indices = @transform_3, window_bounds = array<i64: 32, 32>}, {pipeline_mode = #tpu.pipeline_mode<synchronous>, transform_indices = @transform_4, window_bounds = array<i64: 1, 32>}, {transform_indices = @transform_5, window_bounds = array<i64: 16, 32>}]} {
    %c0 = arith.constant 0 : index
    %c0_0 = arith.constant 0 : index
    %0 = vector.load %arg1[%c0, %c0_0] : memref<16x32xf32, #tpu.memory_space<vmem>>, vector<16x32xf32>
    %cst = arith.constant dense<0.000000e+00> : vector<16xf32>
    %1 = vector.multi_reduction <add>, %0, %cst [1] : vector<16x32xf32> to vector<16xf32>
    %2 = vector.shape_cast %1 : vector<16xf32> to vector<16x1xf32>
    %cst_1 = arith.constant 3.200000e+01 : f32
    %3 = vector.broadcast %cst_1 : f32 to vector<16x1xf32>
    %4 = arith.divf %2, %3 : vector<16x1xf32>
    %5 = vector.broadcast %4 : vector<16x1xf32> to vector<16x32xf32>
    %6 = arith.subf %0, %5 : vector<16x32xf32>
    %7 = arith.mulf %6, %6 : vector<16x32xf32>
    %cst_2 = arith.constant dense<0.000000e+00> : vector<16xf32>
    %8 = vector.multi_reduction <add>, %7, %cst_2 [1] : vector<16x32xf32> to vector<16xf32>
    %9 = vector.shape_cast %8 : vector<16xf32> to vector<16x1xf32>
    %cst_3 = arith.constant 3.100000e+01 : f32
    %10 = vector.broadcast %cst_3 : f32 to vector<16x1xf32>
    %11 = arith.divf %9, %10 : vector<16x1xf32>
    %c0_4 = arith.constant 0 : index
    %c0_5 = arith.constant 0 : index
    %12 = vector.load %arg2[%c0_4, %c0_5] : memref<1x32xf32, #tpu.memory_space<vmem>>, vector<1x32xf32>
    %13 = vector.broadcast %12 : vector<1x32xf32> to vector<16x32xf32>
    %14 = arith.mulf %13, %6 : vector<16x32xf32>
    %15 = math.sqrt %11 : vector<16x1xf32>
    %cst_6 = arith.constant 9.99999997E-7 : f32
    %16 = vector.broadcast %cst_6 : f32 to vector<16x1xf32>
    %17 = arith.addf %15, %16 : vector<16x1xf32>
    %18 = vector.broadcast %17 : vector<16x1xf32> to vector<16x32xf32>
    %19 = arith.divf %14, %18 : vector<16x32xf32>
    %c0_7 = arith.constant 0 : index
    %c0_8 = arith.constant 0 : index
    %20 = vector.load %arg3[%c0_7, %c0_8] : memref<1x32xf32, #tpu.memory_space<vmem>>, vector<1x32xf32>
    %21 = vector.broadcast %20 : vector<1x32xf32> to vector<16x32xf32>
    %22 = arith.addf %19, %21 : vector<16x32xf32>
    %c0_9 = arith.constant 0 : index
    %c0_10 = arith.constant 0 : index
    %23 = vector.load %arg4[%c0_9, %c0_10] : memref<32x32xf32, #tpu.memory_space<vmem>>, vector<32x32xf32>
    %cst_11 = arith.constant dense<0.000000e+00> : vector<16x32xf32>
    %24 = tpu.matmul %22, %23, %cst_11 {dimension_numbers = #tpu.dot_dimension_numbers<[1], [0], [0], [1], [0, 0, 1, 1], [], []>} : vector<16x32xf32>, vector<32x32xf32>, vector<16x32xf32> -> vector<16x32xf32>
    %c0_12 = arith.constant 0 : index
    %c0_13 = arith.constant 0 : index
    %25 = vector.load %arg5[%c0_12, %c0_13] : memref<1x32xf32, #tpu.memory_space<vmem>>, vector<1x32xf32>
    %26 = vector.broadcast %25 : vector<1x32xf32> to vector<16x32xf32>
    %27 = arith.addf %24, %26 : vector<16x32xf32>
    %c0_14 = arith.constant 0 : index
    %c0_15 = arith.constant 0 : index
    %28 = vector.load %arg6[%c0_14, %c0_15] : memref<16x32xf32, #tpu.memory_space<vmem>>, vector<16x32xf32>
    tpu.vector_store %arg6[%c0_14, %c0_15], %27 {strides = array<i32>} : memref<16x32xf32, #tpu.memory_space<vmem>>, vector<16x32xf32>,
    return
  }
  func.func @transform_0(%arg0: i32) -> (i32, i32) {
    %c0_i32 = arith.constant 0 : i32
    %c0_i32_0 = arith.constant 0 : i32
    return %arg0, %c0_i32 : i32, i32
  }
  func.func @transform_1(%arg0: i32) -> (i32, i32) {
    %c0_i32 = arith.constant 0 : i32
    %c0_i32_0 = arith.constant 0 : i32
    %c0_i32_1 = arith.constant 0 : i32
    return %c0_i32, %c0_i32_0 : i32, i32
  }
  func.func @transform_2(%arg0: i32) -> (i32, i32) {
    %c0_i32 = arith.constant 0 : i32
    %c0_i32_0 = arith.constant 0 : i32
    %c0_i32_1 = arith.constant 0 : i32
    return %c0_i32, %c0_i32_0 : i32, i32
  }
  func.func @transform_3(%arg0: i32) -> (i32, i32) {
    %c0_i32 = arith.constant 0 : i32
    %c0_i32_0 = arith.constant 0 : i32
    %c0_i32_1 = arith.constant 0 : i32
    return %c0_i32, %c0_i32_0 : i32, i32
  }
  func.func @transform_4(%arg0: i32) -> (i32, i32) {
    %c0_i32 = arith.constant 0 : i32
    %c0_i32_0 = arith.constant 0 : i32
    %c0_i32_1 = arith.constant 0 : i32
    return %c0_i32, %c0_i32_0 : i32, i32
  }
  func.func @transform_5(%arg0: i32) -> (i32, i32) {
    %c0_i32 = arith.constant 0 : i32
    %c0_i32_0 = arith.constant 0 : i32
    return %arg0, %c0_i32 : i32, i32
  }
}

module attributes {stable_mosaic.version = 11 : i64} {
  func.func @_linear_kernel(%arg0: i32, %arg1: memref<16x32xf32, #tpu.memory_space<vmem>>, %arg2: memref<32x64xf32, #tpu.memory_space<vmem>>, %arg3: memref<1x64xf32, #tpu.memory_space<vmem>>, %arg4: memref<16x64xf32, #tpu.memory_space<vmem>>) attributes {dimension_semantics = [#tpu.dimension_semantics<parallel>], iteration_bounds = array<i64: 1>, scalar_prefetch = 0 : i64, scratch_operands = 0 : i64, tpu.core_type = #tpu.core_type<tc>, window_params = [{transform_indices = @transform_0, window_bounds = array<i64: 16, 32>}, {pipeline_mode = #tpu.pipeline_mode<synchronous>, transform_indices = @transform_1, window_bounds = array<i64: 32, 64>}, {pipeline_mode = #tpu.pipeline_mode<synchronous>, transform_indices = @transform_2, window_bounds = array<i64: 1, 64>}, {transform_indices = @transform_3, window_bounds = array<i64: 16, 64>}]} {
    %c0 = arith.constant 0 : index
    %c0_0 = arith.constant 0 : index
    %0 = vector.load %arg1[%c0, %c0_0] : memref<16x32xf32, #tpu.memory_space<vmem>>, vector<16x32xf32>
    %c0_1 = arith.constant 0 : index
    %c0_2 = arith.constant 0 : index
    %1 = vector.load %arg2[%c0_1, %c0_2] : memref<32x64xf32, #tpu.memory_space<vmem>>, vector<32x64xf32>
    %cst = arith.constant dense<0.000000e+00> : vector<16x64xf32>
    %2 = tpu.matmul %0, %1, %cst {dimension_numbers = #tpu.dot_dimension_numbers<[1], [0], [0], [1], [0, 0, 1, 1], [], []>} : vector<16x32xf32>, vector<32x64xf32>, vector<16x64xf32> -> vector<16x64xf32>
    %c0_3 = arith.constant 0 : index
    %c0_4 = arith.constant 0 : index
    %3 = vector.load %arg3[%c0_3, %c0_4] : memref<1x64xf32, #tpu.memory_space<vmem>>, vector<1x64xf32>
    %4 = vector.broadcast %3 : vector<1x64xf32> to vector<16x64xf32>
    %5 = arith.addf %2, %4 : vector<16x64xf32>
    %c0_5 = arith.constant 0 : index
    %c0_6 = arith.constant 0 : index
    %6 = vector.load %arg4[%c0_5, %c0_6] : memref<16x64xf32, #tpu.memory_space<vmem>>, vector<16x64xf32>
    tpu.vector_store %arg4[%c0_5, %c0_6], %5 {strides = array<i32>} : memref<16x64xf32, #tpu.memory_space<vmem>>, vector<16x64xf32>,
    return
  }
  func.func @transform_0(%arg0: i32) -> (i32, i32) {
    %c0_i32 = arith.constant 0 : i32
    %c0_i32_0 = arith.constant 0 : i32
    return %arg0, %c0_i32 : i32, i32
  }
  func.func @transform_1(%arg0: i32) -> (i32, i32) {
    %c0_i32 = arith.constant 0 : i32
    %c0_i32_0 = arith.constant 0 : i32
    %c0_i32_1 = arith.constant 0 : i32
    return %c0_i32, %c0_i32_0 : i32, i32
  }
  func.func @transform_2(%arg0: i32) -> (i32, i32) {
    %c0_i32 = arith.constant 0 : i32
    %c0_i32_0 = arith.constant 0 : i32
    %c0_i32_1 = arith.constant 0 : i32
    return %c0_i32, %c0_i32_0 : i32, i32
  }
  func.func @transform_3(%arg0: i32) -> (i32, i32) {
    %c0_i32 = arith.constant 0 : i32
    %c0_i32_0 = arith.constant 0 : i32
    return %arg0, %c0_i32 : i32, i32
  }
}

module attributes {stable_mosaic.version = 11 : i64} {
  func.func @_ln_linear_kernel(%arg0: i32, %arg1: memref<16x32xf32, #tpu.memory_space<vmem>>, %arg2: memref<1x32xf32, #tpu.memory_space<vmem>>, %arg3: memref<1x32xf32, #tpu.memory_space<vmem>>, %arg4: memref<32x64xf32, #tpu.memory_space<vmem>>, %arg5: memref<1x64xf32, #tpu.memory_space<vmem>>, %arg6: memref<16x64xf32, #tpu.memory_space<vmem>>) attributes {dimension_semantics = [#tpu.dimension_semantics<parallel>], iteration_bounds = array<i64: 1>, scalar_prefetch = 0 : i64, scratch_operands = 0 : i64, tpu.core_type = #tpu.core_type<tc>, window_params = [{transform_indices = @transform_0, window_bounds = array<i64: 16, 32>}, {pipeline_mode = #tpu.pipeline_mode<synchronous>, transform_indices = @transform_1, window_bounds = array<i64: 1, 32>}, {pipeline_mode = #tpu.pipeline_mode<synchronous>, transform_indices = @transform_2, window_bounds = array<i64: 1, 32>}, {pipeline_mode = #tpu.pipeline_mode<synchronous>, transform_indices = @transform_3, window_bounds = array<i64: 32, 64>}, {pipeline_mode = #tpu.pipeline_mode<synchronous>, transform_indices = @transform_4, window_bounds = array<i64: 1, 64>}, {transform_indices = @transform_5, window_bounds = array<i64: 16, 64>}]} {
    %c0 = arith.constant 0 : index
    %c0_0 = arith.constant 0 : index
    %0 = vector.load %arg1[%c0, %c0_0] : memref<16x32xf32, #tpu.memory_space<vmem>>, vector<16x32xf32>
    %cst = arith.constant dense<0.000000e+00> : vector<16xf32>
    %1 = vector.multi_reduction <add>, %0, %cst [1] : vector<16x32xf32> to vector<16xf32>
    %2 = vector.shape_cast %1 : vector<16xf32> to vector<16x1xf32>
    %cst_1 = arith.constant 3.200000e+01 : f32
    %3 = vector.broadcast %cst_1 : f32 to vector<16x1xf32>
    %4 = arith.divf %2, %3 : vector<16x1xf32>
    %5 = vector.broadcast %4 : vector<16x1xf32> to vector<16x32xf32>
    %6 = arith.subf %0, %5 : vector<16x32xf32>
    %7 = arith.mulf %6, %6 : vector<16x32xf32>
    %cst_2 = arith.constant dense<0.000000e+00> : vector<16xf32>
    %8 = vector.multi_reduction <add>, %7, %cst_2 [1] : vector<16x32xf32> to vector<16xf32>
    %9 = vector.shape_cast %8 : vector<16xf32> to vector<16x1xf32>
    %cst_3 = arith.constant 3.100000e+01 : f32
    %10 = vector.broadcast %cst_3 : f32 to vector<16x1xf32>
    %11 = arith.divf %9, %10 : vector<16x1xf32>
    %c0_4 = arith.constant 0 : index
    %c0_5 = arith.constant 0 : index
    %12 = vector.load %arg2[%c0_4, %c0_5] : memref<1x32xf32, #tpu.memory_space<vmem>>, vector<1x32xf32>
    %13 = vector.broadcast %12 : vector<1x32xf32> to vector<16x32xf32>
    %14 = arith.mulf %13, %6 : vector<16x32xf32>
    %15 = math.sqrt %11 : vector<16x1xf32>
    %cst_6 = arith.constant 9.99999997E-7 : f32
    %16 = vector.broadcast %cst_6 : f32 to vector<16x1xf32>
    %17 = arith.addf %15, %16 : vector<16x1xf32>
    %18 = vector.broadcast %17 : vector<16x1xf32> to vector<16x32xf32>
    %19 = arith.divf %14, %18 : vector<16x32xf32>
    %c0_7 = arith.constant 0 : index
    %c0_8 = arith.constant 0 : index
    %20 = vector.load %arg3[%c0_7, %c0_8] : memref<1x32xf32, #tpu.memory_space<vmem>>, vector<1x32xf32>
    %21 = vector.broadcast %20 : vector<1x32xf32> to vector<16x32xf32>
    %22 = arith.addf %19, %21 : vector<16x32xf32>
    %c0_9 = arith.constant 0 : index
    %c0_10 = arith.constant 0 : index
    %23 = vector.load %arg4[%c0_9, %c0_10] : memref<32x64xf32, #tpu.memory_space<vmem>>, vector<32x64xf32>
    %cst_11 = arith.constant dense<0.000000e+00> : vector<16x64xf32>
    %24 = tpu.matmul %22, %23, %cst_11 {dimension_numbers = #tpu.dot_dimension_numbers<[1], [0], [0], [1], [0, 0, 1, 1], [], []>} : vector<16x32xf32>, vector<32x64xf32>, vector<16x64xf32> -> vector<16x64xf32>
    %c0_12 = arith.constant 0 : index
    %c0_13 = arith.constant 0 : index
    %25 = vector.load %arg5[%c0_12, %c0_13] : memref<1x64xf32, #tpu.memory_space<vmem>>, vector<1x64xf32>
    %26 = vector.broadcast %25 : vector<1x64xf32> to vector<16x64xf32>
    %27 = arith.addf %24, %26 : vector<16x64xf32>
    %cst_14 = arith.constant 0.000000e+00 : f32
    %28 = vector.broadcast %cst_14 : f32 to vector<16x64xf32>
    %29 = arith.maximumf %27, %28 : vector<16x64xf32>
    %c0_15 = arith.constant 0 : index
    %c0_16 = arith.constant 0 : index
    %30 = vector.load %arg6[%c0_15, %c0_16] : memref<16x64xf32, #tpu.memory_space<vmem>>, vector<16x64xf32>
    tpu.vector_store %arg6[%c0_15, %c0_16], %29 {strides = array<i32>} : memref<16x64xf32, #tpu.memory_space<vmem>>, vector<16x64xf32>,
    return
  }
  func.func @transform_0(%arg0: i32) -> (i32, i32) {
    %c0_i32 = arith.constant 0 : i32
    %c0_i32_0 = arith.constant 0 : i32
    return %arg0, %c0_i32 : i32, i32
  }
  func.func @transform_1(%arg0: i32) -> (i32, i32) {
    %c0_i32 = arith.constant 0 : i32
    %c0_i32_0 = arith.constant 0 : i32
    %c0_i32_1 = arith.constant 0 : i32
    return %c0_i32, %c0_i32_0 : i32, i32
  }
  func.func @transform_2(%arg0: i32) -> (i32, i32) {
    %c0_i32 = arith.constant 0 : i32
    %c0_i32_0 = arith.constant 0 : i32
    %c0_i32_1 = arith.constant 0 : i32
    return %c0_i32, %c0_i32_0 : i32, i32
  }
  func.func @transform_3(%arg0: i32) -> (i32, i32) {
    %c0_i32 = arith.constant 0 : i32
    %c0_i32_0 = arith.constant 0 : i32
    %c0_i32_1 = arith.constant 0 : i32
    return %c0_i32, %c0_i32_0 : i32, i32
  }
  func.func @transform_4(%arg0: i32) -> (i32, i32) {
    %c0_i32 = arith.constant 0 : i32
    %c0_i32_0 = arith.constant 0 : i32
    %c0_i32_1 = arith.constant 0 : i32
    return %c0_i32, %c0_i32_0 : i32, i32
  }
  func.func @transform_5(%arg0: i32) -> (i32, i32) {
    %c0_i32 = arith.constant 0 : i32
    %c0_i32_0 = arith.constant 0 : i32
    return %arg0, %c0_i32 : i32, i32
  }
}

module attributes {stable_mosaic.version = 11 : i64} {
  func.func @_linear_residual_kernel(%arg0: i32, %arg1: memref<16x64xf32, #tpu.memory_space<vmem>>, %arg2: memref<64x32xf32, #tpu.memory_space<vmem>>, %arg3: memref<1x32xf32, #tpu.memory_space<vmem>>, %arg4: memref<16x32xf32, #tpu.memory_space<vmem>>, %arg5: memref<16x32xf32, #tpu.memory_space<vmem>>) attributes {dimension_semantics = [#tpu.dimension_semantics<parallel>], iteration_bounds = array<i64: 1>, scalar_prefetch = 0 : i64, scratch_operands = 0 : i64, tpu.core_type = #tpu.core_type<tc>, window_params = [{transform_indices = @transform_0, window_bounds = array<i64: 16, 64>}, {pipeline_mode = #tpu.pipeline_mode<synchronous>, transform_indices = @transform_1, window_bounds = array<i64: 64, 32>}, {pipeline_mode = #tpu.pipeline_mode<synchronous>, transform_indices = @transform_2, window_bounds = array<i64: 1, 32>}, {transform_indices = @transform_3, window_bounds = array<i64: 16, 32>}, {transform_indices = @transform_4, window_bounds = array<i64: 16, 32>}]} {
    %c0 = arith.constant 0 : index
    %c0_0 = arith.constant 0 : index
    %0 = vector.load %arg1[%c0, %c0_0] : memref<16x64xf32, #tpu.memory_space<vmem>>, vector<16x64xf32>
    %c0_1 = arith.constant 0 : index
    %c0_2 = arith.constant 0 : index
    %1 = vector.load %arg2[%c0_1, %c0_2] : memref<64x32xf32, #tpu.memory_space<vmem>>, vector<64x32xf32>
    %cst = arith.constant dense<0.000000e+00> : vector<16x32xf32>
    %2 = tpu.matmul %0, %1, %cst {dimension_numbers = #tpu.dot_dimension_numbers<[1], [0], [0], [1], [0, 0, 1, 1], [], []>} : vector<16x64xf32>, vector<64x32xf32>, vector<16x32xf32> -> vector<16x32xf32>
    %c0_3 = arith.constant 0 : index
    %c0_4 = arith.constant 0 : index
    %3 = vector.load %arg3[%c0_3, %c0_4] : memref<1x32xf32, #tpu.memory_space<vmem>>, vector<1x32xf32>
    %4 = vector.broadcast %3 : vector<1x32xf32> to vector<16x32xf32>
    %5 = arith.addf %2, %4 : vector<16x32xf32>
    %c0_5 = arith.constant 0 : index
    %c0_6 = arith.constant 0 : index
    %6 = vector.load %arg4[%c0_5, %c0_6] : memref<16x32xf32, #tpu.memory_space<vmem>>, vector<16x32xf32>
    %7 = arith.addf %5, %6 : vector<16x32xf32>
    %c0_7 = arith.constant 0 : index
    %c0_8 = arith.constant 0 : index
    %8 = vector.load %arg5[%c0_7, %c0_8] : memref<16x32xf32, #tpu.memory_space<vmem>>, vector<16x32xf32>
    tpu.vector_store %arg5[%c0_7, %c0_8], %7 {strides = array<i32>} : memref<16x32xf32, #tpu.memory_space<vmem>>, vector<16x32xf32>,
    return
  }
  func.func @transform_0(%arg0: i32) -> (i32, i32) {
    %c0_i32 = arith.constant 0 : i32
    %c0_i32_0 = arith.constant 0 : i32
    return %arg0, %c0_i32 : i32, i32
  }
  func.func @transform_1(%arg0: i32) -> (i32, i32) {
    %c0_i32 = arith.constant 0 : i32
    %c0_i32_0 = arith.constant 0 : i32
    %c0_i32_1 = arith.constant 0 : i32
    return %c0_i32, %c0_i32_0 : i32, i32
  }
  func.func @transform_2(%arg0: i32) -> (i32, i32) {
    %c0_i32 = arith.constant 0 : i32
    %c0_i32_0 = arith.constant 0 : i32
    %c0_i32_1 = arith.constant 0 : i32
    return %c0_i32, %c0_i32_0 : i32, i32
  }
  func.func @transform_3(%arg0: i32) -> (i32, i32) {
    %c0_i32 = arith.constant 0 : i32
    %c0_i32_0 = arith.constant 0 : i32
    return %arg0, %c0_i32 : i32, i32
  }
  func.func @transform_4(%arg0: i32) -> (i32, i32) {
    %c0_i32 = arith.constant 0 : i32
    %c0_i32_0 = arith.constant 0 : i32
    return %arg0, %c0_i32 : i32, i32
  }
}

</mosaic_0001>

<bundles_post_ra>
// kernel: decoder_layer_forward.11
= control target key start
LH: loop header
LB: loop body
LE: loop exit
PB: predicated region body
PF: predicated region fallthrough
CT: control target
= control target key end

     0   :  { %vm27_vm0 = vcmask 261120   ;;  %s136_s1 = inlined_call_operand.vmem [shape: f32[32,32], index: 1, kind: input, shape index: {}]   ;;  %s137_s2 = inlined_call_operand.vmem [shape: f32[1,32], index: 2, kind: input, shape index: {}]   ;;  %s138_s0 = inlined_call_operand.vmem [shape: f32[16,32], index: 0, kind: input, shape index: {}]   ;;  %s139_s3 = inlined_call_operand.vmem [shape: f32[16,32], index: 3, kind: input, shape index: {}]   ;;  %s140_s4 = inlined_call_operand.vmem [shape: f32[16,32], index: 4, kind: output, shape index: {}]  }
   0x1   :  { %v22_v0 = vld [vmem:[%s136_s1 + $0x18] sm:$0xff]  ;;  %v21_v1 = vld [vmem:[%s136_s1 + $0x10] sm:$0xff]  ;;  %v20_v2 = vld [vmem:[%s136_s1 + $0x8] sm:$0xff] }
   0x2   :  { %46 = vmatpush.msra.mxu0 %v22_v0  ;;  %69 = vmatpush.msra.mxu1 %v22_v0  ;;  %v19_v3 = vld [vmem:[%s136_s1] sm:$0xff]  ;;  %v18_v5 = vld [vmem:[%s138_s0 + $0x8] sm:$0xff] }
   0x3   :  { %v17_v4 = vld [vmem:[%s138_s0] sm:$0xff]  ;;  %v58_v10 = vld [vmem:[%s139_s3 + $0x8] sm:$0xff] }
   0x4   :  { %47 = vmatpush.msra.mxu0 %v21_v1  ;;  %70 = vmatpush.msra.mxu1 %v21_v1  ;;  %v73_v6 = vld [vmem:[%s137_s2] ss:$0 sm:$0xff] }
   0x5   :  { %v57_v8 = vld [vmem:[%s139_s3] sm:$0xff] }
   0x6   :  { %48 = vmatpush.msra.mxu0 %v20_v2  ;;  %71 = vmatpush.msra.mxu1 %v20_v2 }
   0x8   :  { %49 = vmatpush.msra.mxu0 %v19_v3  ;;  %72 = vmatpush.msra.mxu1 %v19_v3 }
   0x9   :  { %67 = vmatmul.msk.f32.vlgmr.msra.gmra.mxu0 %vm27_vm0, %v17_v4  ;;  %68 = vmatmul.msk.f32.vlgmr.msra.gmra.mxu1 %vm27_vm0, %v18_v5 }
  0x86   :  { %v51_v7 = vpop.f32.mrf.mxu0  ;;  %v54_v9 = vpop.f32.mrf.mxu1 }
  0x87   :  { %v52_v11 = vadd.f32 %v73_v6, %v51_v7  ;;  %v55_v12 = vadd.f32 %v73_v6, %v54_v9 }
  0x89   :  { %v59_v13 = vadd.f32 %v57_v8, %v52_v11  ;;  %v60_v14 = vadd.f32 %v58_v10, %v55_v12 }
  0x8b   :  { %61 = vst.msk [vmem:[%s140_s4] sm:$0xff] %vm27_vm0, %v59_v13 }
  0x8c   :  { %62 = vst.msk [vmem:[%s140_s4 + $0x8] sm:$0xff] %vm27_vm0, %v60_v14 }

// kernel: decoder_layer_forward.9
= control target key start
LH: loop header
LB: loop body
LE: loop exit
PB: predicated region body
PF: predicated region fallthrough
CT: control target
= control target key end

     0   :  { %vm22_vm0 = vcmask 261120   ;;  %v192_v4 = vmov 32.0   ;;  %v193_v24 = vmov 31.0   ;;  %vm162_vm15 = vcmask 785408   ;;  %s269_s0 = inlined_call_operand.vmem [shape: f32[16,32], index: 0, kind: input, shape index: {}]   ;;  %s270_s1 = inlined_call_operand.vmem [shape: f32[1,32], index: 1, kind: input, shape index: {}]   ;;  %s271_s2 = inlined_call_operand.vmem [shape: f32[1,32], index: 2, kind: input, shape index: {}]   ;;  %s272_s4 = inlined_call_operand.vmem [shape: f32[1,96], index: 4, kind: input, shape index: {}]   ;;  %s273_s3 = inlined_call_operand.vmem [shape: f32[32,96], index: 3, kind: input, shape index: {}]   ;;  %s274_s5 = inlined_call_operand.vmem [shape: f32[16,96], index: 5, kind: output, shape index: {}]  }
   0x1   :  { %v20_v0 = vld [vmem:[%s269_s0] sm:$0xff]  ;;  %v21_v2 = vld [vmem:[%s269_s0 + $0x8] sm:$0xff]  ;;  %180 = vrcp.f32 %v192_v4  ;;  %v128_v30 = vld [vmem:[%s273_s3 + $0x18] sm:$0xff] }
   0x2   :  { %v23_v1 = vsel %vm22_vm0, %v20_v0, 0.0  ;;  %v26_v3 = vsel %vm22_vm0, %v21_v2, 0.0  ;;  %v177_v12 = vld [vmem:[%s270_s1] ss:$0 sm:$0xff]  ;;  %182 = vrcp.f32 %v193_v24  ;;  %v127_v31 = vld [vmem:[%s273_s3 + $0x10] sm:$0xff]  ;;  %151 = vmatpush.msra.mxu0 %v128_v30  ;;  %171 = vmatpush.msra.mxu1 %v128_v30  ;;  %v126_v33 = vld [vmem:[%s273_s3 + $0x8] sm:$0xff] }
   0x3   :  { %24 = vadd.xlane.f32.xlu0 %v23_v1  ;;  %v125_v35 = vld [vmem:[%s273_s3] sm:$0xff] }
   0x4   :  { %152 = vmatpush.msra.mxu0 %v127_v31  ;;  %172 = vmatpush.msra.mxu1 %v127_v31 }
   0x6   :  { %153 = vmatpush.msra.mxu0 %v126_v33  ;;  %173 = vmatpush.msra.mxu1 %v126_v33 }
   0x7   :  { %v181_v5 = vpop.eup %180 }
   0x8   :  { %v30_v6 = vmul.f32 32.0, %v181_v5  ;;  %vm34_vm1 = vweird.f32 %v181_v5  ;;  %v183_v25 = vpop.eup %182  ;;  %154 = vmatpush.msra.mxu0 %v125_v35  ;;  %174 = vmatpush.msra.mxu1 %v125_v35 }
   0x9   :  { %v49_v26 = vmul.f32 31.0, %v183_v25  ;;  %vm53_vm2 = vweird.f32 %v183_v25 }
   0xa   :  { %v31_v7 = vsub.f32 1.0, %v30_v6 }
   0xb   :  { %27 = vadd.xlane.f32.xlu0 %v26_v3  ;;  %v50_v27 = vsub.f32 1.0, %v49_v26 }
   0xc   :  { %v32_v8 = vmul.f32 %v181_v5, %v31_v7  ;;  %v178_v7 = vld [vmem:[%s271_s2] ss:$0 sm:$0xff] }
   0xd   :  { %v51_v28 = vmul.f32 %v183_v25, %v50_v27 }
   0xe   :  { %v33_v9 = vadd.f32 %v181_v5, %v32_v8 }
   0xf   :  { %v52_v29 = vadd.f32 %v183_v25, %v51_v28 }
  0x10   :  { %v35_v10 = vsel %vm34_vm1, %v181_v5, %v33_v9 }
  0x11   :  { %v54_v32 = vsel %vm53_vm2, %v183_v25, %v52_v29 }
  0x76   :  { %v25_v11 = vpop.xlane.xlu0 %24 }
  0x77   :  { %v36_v13 = vmul.f32 %v35_v10, %v25_v11 }
  0x79   :  { %v38_v14 = vsub.f32 %v20_v0, %v36_v13 }
  0x7b   :  { %v235_v15 = vmul.f32 %v177_v12, %v38_v14  ;;  %v40_v16 = vmul.f32 %v38_v14, %v38_v14 }
  0x7d   :  { %v42_v17 = vsel %vm22_vm0, %v40_v16, 0.0 }
  0x7e   :  { %43 = vadd.xlane.f32.xlu1 %v42_v17  ;;  %v28_v18 = vpop.xlane.xlu0 %27 }
  0x7f   :  { %v37_v19 = vmul.f32 %v35_v10, %v28_v18 }
  0x81   :  { %v39_v20 = vsub.f32 %v21_v2, %v37_v19 }
  0x83   :  { %v238_v21 = vmul.f32 %v177_v12, %v39_v20  ;;  %v41_v22 = vmul.f32 %v39_v20, %v39_v20 }
  0x85   :  { %v45_v23 = vsel %vm22_vm0, %v41_v22, 0.0 }
  0x86   :  { %46 = vadd.xlane.f32.xlu1 %v45_v23 }
  0xf1   :  { %v44_v34 = vpop.xlane.xlu1 %43 }
  0xf2   :  { %v55_v36 = vmul.f32 %v54_v32, %v44_v34 }
  0xf4   :  { %184 = vrsqrt.f32 %v55_v36  ;;  %vm70_vm3 = vcmp.eq.f32.partialorder %v55_v36, inf  ;;  %v73_v49 = vand.u32 2147483648, %v55_v36  ;;  %vm72_vm4 = vcmp.eq.f32.partialorder %v55_v36, 0.0 }
  0xf9   :  { %v47_v37 = vpop.xlane.xlu1 %46 }
  0xfa   :  { %v185_v38 = vpop.eup %184  ;;  %v56_v39 = vmul.f32 %v54_v32, %v47_v37 }
  0xfb   :  { %v64_v40 = vmul.f32 %v185_v38, %v55_v36 }
  0xfc   :  { %186 = vrsqrt.f32 %v56_v39  ;;  %vm82_vm5 = vcmp.eq.f32.partialorder %v56_v39, inf  ;;  %v85_v57 = vand.u32 2147483648, %v56_v39  ;;  %vm84_vm6 = vcmp.eq.f32.partialorder %v56_v39, 0.0 }
  0xfd   :  { %v65_v41 = vmul.f32 %v185_v38, %v64_v40 }
  0xff   :  { %v66_v42 = vmul.f32 0.5, %v65_v41 }
 0x101   :  { %v67_v43 = vsub.f32 1.5, %v66_v42 }
 0x102   :  { %v187_v44 = vpop.eup %186 }
 0x103   :  { %v68_v45 = vmul.f32 %v185_v38, %v67_v43  ;;  %v76_v46 = vmul.f32 %v187_v44, %v56_v39 }
 0x105   :  { %v69_v47 = vmul.f32 %v68_v45, %v55_v36  ;;  %v77_v48 = vmul.f32 %v187_v44, %v76_v46 }
 0x107   :  { %v78_v50 = vmul.f32 0.5, %v77_v48  ;;  %v71_v51 = vsel %vm70_vm3, %v55_v36, %v69_v47 }
 0x108   :  { %v74_v52 = vsel %vm72_vm4, %v73_v49, %v71_v51 }
 0x109   :  { %v79_v53 = vsub.f32 1.5, %v78_v50  ;;  %v87_v54 = vadd.f32 1e-06, %v74_v52 }
 0x10b   :  { %v80_v55 = vmul.f32 %v187_v44, %v79_v53  ;;  %188 = vrcp.f32 %v87_v54  ;;  %v100_v0 = vand.u32 2147483648, %v87_v54  ;;  %v98_v2 = vand.u32 2147483647, %v87_v54 }
 0x10c   :  { %vm94_vm8 = vweird.f32 %v87_v54 }
 0x10d   :  { %v81_v56 = vmul.f32 %v80_v55, %v56_v39  ;;  %v101_v5 = vor.u32 1.1754944e-38, %v100_v0  ;;  %vm99_vm10 = vcmp.eq.f32.partialorder %v98_v2, 8.507059e+37 }
 0x10f   :  { %v83_v58 = vsel %vm82_vm5, %v56_v39, %v81_v56 }
 0x110   :  { %v86_v59 = vsel %vm84_vm6, %v85_v57, %v83_v58 }
 0x111   :  { %v189_v60 = vpop.eup %188  ;;  %v88_v61 = vadd.f32 1e-06, %v86_v59 }
 0x112   :  { %v90_v62 = vmul.f32 %v189_v60, %v87_v54  ;;  %vm95_vm7 = vweird.f32 %v189_v60 }
 0x113   :  { %190 = vrcp.f32 %v88_v61  ;;  %vm96_vm9 = vmor %vm94_vm8, %vm95_vm7  ;;  %v115_v12 = vand.u32 2147483648, %v88_v61  ;;  %v113_v16 = vand.u32 2147483647, %v88_v61  ;;  %vm109_vm12 = vweird.f32 %v88_v61 }
 0x114   :  { %v91_v63 = vsub.f32 1.0, %v90_v62 }
 0x115   :  { %v116_v18 = vor.u32 1.1754944e-38, %v115_v12  ;;  %vm114_vm14 = vcmp.eq.f32.partialorder %v113_v16, 8.507059e+37 }
 0x116   :  { %v92_v1 = vmul.f32 %v189_v60, %v91_v63 }
 0x118   :  { %v93_v3 = vadd.f32 %v189_v60, %v92_v1 }
 0x119   :  { %v191_v4 = vpop.eup %190 }
 0x11a   :  { %v97_v6 = vsel %vm96_vm9, %v189_v60, %v93_v3  ;;  %v105_v8 = vmul.f32 %v191_v4, %v88_v61  ;;  %vm110_vm11 = vweird.f32 %v191_v4 }
 0x11b   :  { %v102_v9 = vsel %vm99_vm10, %v101_v5, %v97_v6  ;;  %vm111_vm13 = vmor %vm109_vm12, %vm110_vm11 }
 0x11c   :  { %v103_v10 = vmul.f32 %v102_v9, %v235_v15  ;;  %v106_v11 = vsub.f32 1.0, %v105_v8  ;;  %v179_v15 = vld [vmem:[%s272_s4] ss:$0 sm:$0xff] }
 0x11e   :  { %v123_v13 = vadd.f32 %v178_v7, %v103_v10  ;;  %v107_v14 = vmul.f32 %v191_v4, %v106_v11 }
 0x120   :  { %169 = vmatmul.msk.f32.vlgmr.msra.gmra.mxu0 %vm22_vm0, %v123_v13  ;;  %v108_v17 = vadd.f32 %v191_v4, %v107_v14 }
 0x122   :  { %v112_v19 = vsel %vm111_vm13, %v191_v4, %v108_v17 }
 0x123   :  { %v117_v20 = vsel %vm114_vm14, %v116_v18, %v112_v19 }
 0x124   :  { %v118_v22 = vmul.f32 %v117_v20, %v238_v21 }
 0x126   :  { %v124_v23 = vadd.f32 %v178_v7, %v118_v22 }
 0x128   :  { %170 = vmatmul.msk.f32.vlgmr.msra.gmra.mxu1 %vm22_vm0, %v124_v23 }
 0x19d   :  { %v156_v24 = vpop.f32.mrf.mxu0 }
 0x19e   :  { %v157_v25 = vadd.f32 %v179_v15, %v156_v24 }
 0x1a0   :  { %163 = vst.msk [vmem:[%s274_s5] sm:$0xff] %vm162_vm15, %v157_v25 }
 0x1a5   :  { %v159_v26 = vpop.f32.mrf.mxu1 }
 0x1a6   :  { %v160_v27 = vadd.f32 %v179_v15, %v159_v26 }
 0x1a8   :  { %164 = vst.msk [vmem:[%s274_s5 + $0x8] sm:$0xff] %vm162_vm15, %v160_v27 }

// kernel: decoder_layer_forward.12
= control target key start
LH: loop header
LB: loop body
LE: loop exit
PB: predicated region body
PF: predicated region fallthrough
CT: control target
= control target key end

     0   :  { %vm22_vm0 = vcmask 261120   ;;  %v191_v4 = vmov 32.0   ;;  %v192_v24 = vmov 31.0   ;;  %s270_s0 = inlined_call_operand.vmem [shape: f32[16,32], index: 0, kind: input, shape index: {}]   ;;  %s271_s1 = inlined_call_operand.vmem [shape: f32[1,32], index: 1, kind: input, shape index: {}]   ;;  %s272_s2 = inlined_call_operand.vmem [shape: f32[1,32], index: 2, kind: input, shape index: {}]   ;;  %s273_s4 = inlined_call_operand.vmem [shape: f32[1,32], index: 4, kind: input, shape index: {}]   ;;  %s274_s3 = inlined_call_operand.vmem [shape: f32[32,32], index: 3, kind: input, shape index: {}]   ;;  %s275_s5 = inlined_call_operand.vmem [shape: f32[16,32], index: 5, kind: output, shape index: {}]  }
   0x1   :  { %v20_v0 = vld [vmem:[%s270_s0] sm:$0xff]  ;;  %v21_v2 = vld [vmem:[%s270_s0 + $0x8] sm:$0xff]  ;;  %179 = vrcp.f32 %v191_v4  ;;  %v128_v30 = vld [vmem:[%s274_s3 + $0x18] sm:$0xff] }
   0x2   :  { %v23_v1 = vsel %vm22_vm0, %v20_v0, 0.0  ;;  %v26_v3 = vsel %vm22_vm0, %v21_v2, 0.0  ;;  %v176_v12 = vld [vmem:[%s271_s1] ss:$0 sm:$0xff]  ;;  %181 = vrcp.f32 %v192_v24  ;;  %v127_v31 = vld [vmem:[%s274_s3 + $0x10] sm:$0xff]  ;;  %151 = vmatpush.msra.mxu0 %v128_v30  ;;  %170 = vmatpush.msra.mxu1 %v128_v30  ;;  %v126_v33 = vld [vmem:[%s274_s3 + $0x8] sm:$0xff] }
   0x3   :  { %24 = vadd.xlane.f32.xlu0 %v23_v1  ;;  %v125_v35 = vld [vmem:[%s274_s3] sm:$0xff] }
   0x4   :  { %152 = vmatpush.msra.mxu0 %v127_v31  ;;  %171 = vmatpush.msra.mxu1 %v127_v31 }
   0x6   :  { %153 = vmatpush.msra.mxu0 %v126_v33  ;;  %172 = vmatpush.msra.mxu1 %v126_v33 }
   0x7   :  { %v180_v5 = vpop.eup %179 }
   0x8   :  { %v30_v6 = vmul.f32 32.0, %v180_v5  ;;  %vm34_vm1 = vweird.f32 %v180_v5  ;;  %v182_v25 = vpop.eup %181  ;;  %154 = vmatpush.msra.mxu0 %v125_v35  ;;  %173 = vmatpush.msra.mxu1 %v125_v35 }
   0x9   :  { %v49_v26 = vmul.f32 31.0, %v182_v25  ;;  %vm53_vm2 = vweird.f32 %v182_v25 }
   0xa   :  { %v31_v7 = vsub.f32 1.0, %v30_v6 }
   0xb   :  { %27 = vadd.xlane.f32.xlu0 %v26_v3  ;;  %v50_v27 = vsub.f32 1.0, %v49_v26 }
   0xc   :  { %v32_v8 = vmul.f32 %v180_v5, %v31_v7  ;;  %v177_v7 = vld [vmem:[%s272_s2] ss:$0 sm:$0xff] }
   0xd   :  { %v51_v28 = vmul.f32 %v182_v25, %v50_v27 }
   0xe   :  { %v33_v9 = vadd.f32 %v180_v5, %v32_v8 }
   0xf   :  { %v52_v29 = vadd.f32 %v182_v25, %v51_v28 }
  0x10   :  { %v35_v10 = vsel %vm34_vm1, %v180_v5, %v33_v9 }
  0x11   :  { %v54_v32 = vsel %vm53_vm2, %v182_v25, %v52_v29 }
  0x76   :  { %v25_v11 = vpop.xlane.xlu0 %24 }
  0x77   :  { %v36_v13 = vmul.f32 %v35_v10, %v25_v11 }
  0x79   :  { %v38_v14 = vsub.f32 %v20_v0, %v36_v13 }
  0x7b   :  { %v234_v15 = vmul.f32 %v176_v12, %v38_v14  ;;  %v40_v16 = vmul.f32 %v38_v14, %v38_v14 }
  0x7d   :  { %v42_v17 = vsel %vm22_vm0, %v40_v16, 0.0 }
  0x7e   :  { %43 = vadd.xlane.f32.xlu1 %v42_v17  ;;  %v28_v18 = vpop.xlane.xlu0 %27 }
  0x7f   :  { %v37_v19 = vmul.f32 %v35_v10, %v28_v18 }
  0x81   :  { %v39_v20 = vsub.f32 %v21_v2, %v37_v19 }
  0x83   :  { %v237_v21 = vmul.f32 %v176_v12, %v39_v20  ;;  %v41_v22 = vmul.f32 %v39_v20, %v39_v20 }
  0x85   :  { %v45_v23 = vsel %vm22_vm0, %v41_v22, 0.0 }
  0x86   :  { %46 = vadd.xlane.f32.xlu1 %v45_v23 }
  0xf1   :  { %v44_v34 = vpop.xlane.xlu1 %43 }
  0xf2   :  { %v55_v36 = vmul.f32 %v54_v32, %v44_v34 }
  0xf4   :  { %183 = vrsqrt.f32 %v55_v36  ;;  %vm70_vm3 = vcmp.eq.f32.partialorder %v55_v36, inf  ;;  %v73_v49 = vand.u32 2147483648, %v55_v36  ;;  %vm72_vm4 = vcmp.eq.f32.partialorder %v55_v36, 0.0 }
  0xf9   :  { %v47_v37 = vpop.xlane.xlu1 %46 }
  0xfa   :  { %v184_v38 = vpop.eup %183  ;;  %v56_v39 = vmul.f32 %v54_v32, %v47_v37 }
  0xfb   :  { %v64_v40 = vmul.f32 %v184_v38, %v55_v36 }
  0xfc   :  { %185 = vrsqrt.f32 %v56_v39  ;;  %vm82_vm5 = vcmp.eq.f32.partialorder %v56_v39, inf  ;;  %v85_v57 = vand.u32 2147483648, %v56_v39  ;;  %vm84_vm6 = vcmp.eq.f32.partialorder %v56_v39, 0.0 }
  0xfd   :  { %v65_v41 = vmul.f32 %v184_v38, %v64_v40 }
  0xff   :  { %v66_v42 = vmul.f32 0.5, %v65_v41 }
 0x101   :  { %v67_v43 = vsub.f32 1.5, %v66_v42 }
 0x102   :  { %v186_v44 = vpop.eup %185 }
 0x103   :  { %v68_v45 = vmul.f32 %v184_v38, %v67_v43  ;;  %v76_v46 = vmul.f32 %v186_v44, %v56_v39 }
 0x105   :  { %v69_v47 = vmul.f32 %v68_v45, %v55_v36  ;;  %v77_v48 = vmul.f32 %v186_v44, %v76_v46 }
 0x107   :  { %v78_v50 = vmul.f32 0.5, %v77_v48  ;;  %v71_v51 = vsel %vm70_vm3, %v55_v36, %v69_v47 }
 0x108   :  { %v74_v52 = vsel %vm72_vm4, %v73_v49, %v71_v51 }
 0x109   :  { %v79_v53 = vsub.f32 1.5, %v78_v50  ;;  %v87_v54 = vadd.f32 1e-06, %v74_v52 }
 0x10b   :  { %v80_v55 = vmul.f32 %v186_v44, %v79_v53  ;;  %187 = vrcp.f32 %v87_v54  ;;  %v100_v0 = vand.u32 2147483648, %v87_v54  ;;  %v98_v2 = vand.u32 2147483647, %v87_v54 }
 0x10c   :  { %vm94_vm8 = vweird.f32 %v87_v54 }
 0x10d   :  { %v81_v56 = vmul.f32 %v80_v55, %v56_v39  ;;  %v101_v5 = vor.u32 1.1754944e-38, %v100_v0  ;;  %vm99_vm10 = vcmp.eq.f32.partialorder %v98_v2, 8.507059e+37 }
 0x10f   :  { %v83_v58 = vsel %vm82_vm5, %v56_v39, %v81_v56 }
 0x110   :  { %v86_v59 = vsel %vm84_vm6, %v85_v57, %v83_v58 }
 0x111   :  { %v188_v60 = vpop.eup %187  ;;  %v88_v61 = vadd.f32 1e-06, %v86_v59 }
 0x112   :  { %v90_v62 = vmul.f32 %v188_v60, %v87_v54  ;;  %vm95_vm7 = vweird.f32 %v188_v60 }
 0x113   :  { %189 = vrcp.f32 %v88_v61  ;;  %vm96_vm9 = vmor %vm94_vm8, %vm95_vm7  ;;  %v115_v12 = vand.u32 2147483648, %v88_v61  ;;  %v113_v16 = vand.u32 2147483647, %v88_v61  ;;  %vm109_vm12 = vweird.f32 %v88_v61 }
 0x114   :  { %v91_v63 = vsub.f32 1.0, %v90_v62 }
 0x115   :  { %v116_v18 = vor.u32 1.1754944e-38, %v115_v12  ;;  %vm114_vm14 = vcmp.eq.f32.partialorder %v113_v16, 8.507059e+37 }
 0x116   :  { %v92_v1 = vmul.f32 %v188_v60, %v91_v63 }
 0x118   :  { %v93_v3 = vadd.f32 %v188_v60, %v92_v1 }
 0x119   :  { %v190_v4 = vpop.eup %189 }
 0x11a   :  { %v97_v6 = vsel %vm96_vm9, %v188_v60, %v93_v3  ;;  %v105_v8 = vmul.f32 %v190_v4, %v88_v61  ;;  %vm110_vm11 = vweird.f32 %v190_v4 }
 0x11b   :  { %v102_v9 = vsel %vm99_vm10, %v101_v5, %v97_v6  ;;  %vm111_vm13 = vmor %vm109_vm12, %vm110_vm11 }
 0x11c   :  { %v103_v10 = vmul.f32 %v102_v9, %v234_v15  ;;  %v106_v11 = vsub.f32 1.0, %v105_v8  ;;  %v178_v15 = vld [vmem:[%s273_s4] ss:$0 sm:$0xff] }
 0x11e   :  { %v123_v13 = vadd.f32 %v177_v7, %v103_v10  ;;  %v107_v14 = vmul.f32 %v190_v4, %v106_v11 }
 0x120   :  { %168 = vmatmul.msk.f32.vlgmr.msra.gmra.mxu0 %vm22_vm0, %v123_v13  ;;  %v108_v17 = vadd.f32 %v190_v4, %v107_v14 }
 0x122   :  { %v112_v19 = vsel %vm111_vm13, %v190_v4, %v108_v17 }
 0x123   :  { %v117_v20 = vsel %vm114_vm14, %v116_v18, %v112_v19 }
 0x124   :  { %v118_v22 = vmul.f32 %v117_v20, %v237_v21 }
 0x126   :  { %v124_v23 = vadd.f32 %v177_v7, %v118_v22 }
 0x128   :  { %169 = vmatmul.msk.f32.vlgmr.msra.gmra.mxu1 %vm22_vm0, %v124_v23 }
 0x19d   :  { %v156_v24 = vpop.f32.mrf.mxu0 }
 0x19e   :  { %v157_v25 = vadd.f32 %v178_v15, %v156_v24 }
 0x1a0   :  { %162 = vst.msk [vmem:[%s275_s5] sm:$0xff] %vm22_vm0, %v157_v25 }
 0x1a5   :  { %v159_v26 = vpop.f32.mrf.mxu1 }
 0x1a6   :  { %v160_v27 = vadd.f32 %v178_v15, %v159_v26 }
 0x1a8   :  { %163 = vst.msk [vmem:[%s275_s5 + $0x8] sm:$0xff] %vm22_vm0, %v160_v27 }

// kernel: decoder_layer_forward.10
= control target key start
LH: loop header
LB: loop body
LE: loop exit
PB: predicated region body
PF: predicated region fallthrough
CT: control target
= control target key end

     0   :  { %s652_s15 = smov 0   ;;  %s654_s16 = smov 0   ;;  %s724_s0 = inlined_call_operand.vmem [shape: f32[2,4,8,8], index: 0, kind: input, shape index: {}]   ;;  %s725_s1 = inlined_call_operand.vmem [shape: f32[2,4,8,8], index: 1, kind: input, shape index: {}]   ;;  %s726_s2 = inlined_call_operand.vmem [shape: f32[2,4,8,8], index: 2, kind: input, shape index: {}]   ;;  %s727_s3 = inlined_call_operand.vmem [shape: s32[2,8,8], index: 3, kind: input, shape index: {}]   ;;  %s728_s4 = inlined_call_operand.vmem [shape: f32[2,4,8,8], index: 4, kind: output, shape index: {}]  }
   0x1   :  { %s656_s17 = smov 0   ;;  %s658_s18 = smov 0  }
   0x2   :  { %s660_s19 = smov 0  }
   0x3 LB: > { %s23_s20 = sadd.s32 1, %s617_s17  ;;  %s26_s21 = sadd.s32 1, %s621_s18  ;;  %s625_s19 = sphi %s660_s19, %s14_s19   ;;  %s621_s18 = sphi %s658_s18, %s732_s18   ;;  %s617_s17 = sphi %s656_s17, %s731_s17   ;;  %s613_s16 = sphi %s654_s16, %s730_s16   ;;  %s609_s15 = sphi %s652_s15, %s729_s15  }
   0x4   : > { %p24_p0 = scmp.ge.s32.totalorder %s23_s20, 4  ;;  %p528_p1 = scmp.ge.s32.totalorder %s625_s19, 1 }
   0x5   : > { %p220_p2 = scmp.lt.s32.totalorder %s625_s19, 9 }
   0x6   : > { %s734_s20 = smov (%p24_p0, %s23_s20), 0  ;;  %s736_s21 = smov (!%p24_p0, %s26_s21), %s621_s18 }
   0x7   : > { %p221_p3 = pnand %p528_p1, %p220_p2  ;;  %p28_p4 = scmp.ge.s32.totalorder %s736_s21, 2 }
   0x8   : > { %p272_p5 = scmp.lt.s32.totalorder (!%p221_p3), %s613_s16, 1  ;;  %p274_p6 = scmp.lt.s32.totalorder (!%p221_p3), %s609_s15, 3 }
   0x9   : > { %s738_s21 = smov (%p28_p4, %s736_s21), 0  ;;  %224 = sbr.rel (%p221_p3) target bundleno = 543 (0x21f), region = 36 }
   0xe   : > { %s740_s16 = smov (!%p272_p5, %s613_s16), 1  ;;  %s742_s15 = smov (!%p274_p6, %s609_s15), 3  ;;  %vm312_vm0 = vcmask 64512  }
   0xf   : > { %s529_s22 = sshll.u32 %s740_s16, 2  ;;  %s535_s5 = sshll.u32 %s740_s16, 3 }
  0x10   : > { %s277_s23 = sadd.s32 %s529_s22, %s742_s15  ;;  %s299_s8 = scalar_lea.vmem %s727_s3, %s535_s5 }
  0x11   : > { %s682_s24 = sshll.u32 %s277_s23, 3  ;;  %v311_v2 = vld [vmem:[%s299_s8] sm:$0xff] }
  0x12   : > { %s287_s27 = scalar_lea.vmem %s725_s1, %s682_s24  ;;  %s279_s30 = scalar_lea.vmem %s724_s0, %s682_s24  ;;  %vm340_vm1 = vcmp.eq.s32.totalorder %v311_v2, 0 }
  0x13   : > { %v309_v0 = vld [vmem:[%s287_s27] sm:$0xff]  ;;  %s295_s11 = scalar_lea.vmem %s726_s2, %s682_s24  ;;  %s307_s14 = scalar_lea.vmem %s728_s4, %s682_s24 }
  0x14   : > { %538 = vmatpush.xpose.msk.msra.mxu0 %vm312_vm0, %v309_v0  ;;  %v308_v1 = vld [vmem:[%s279_s30] sm:$0xff] }
  0x15   : > { %v310_v12 = vld [vmem:[%s295_s11] sm:$0xff] }
  0x16   : > { %384 = vmatpush.msra.mxu1 %v310_v12 }
  0x17   : > { %539 = vmatmul.msk.f32.vlgmr.msra.gmra.mxu0 %vm312_vm0, %v308_v1 }
  0x94   : > { %v336_v3 = vpop.f32.mrf.mxu0 }
  0x95   : > { %v339_v4 = vmul.f32 0.35355338, %v336_v3 }
  0x97   : > { %v341_v5 = vsel %vm340_vm1, -1e+09, %v339_v4 }
  0x98   : > { %v342_v6 = vsel %vm312_vm0, %v341_v5, -inf }
  0x99   : > { %343 = vmax.xlane.f32.xlu0 %v342_v6 }
 0x10c   : > { %v344_v7 = vpop.xlane.xlu0 %343 }
 0x10d   : > { %v345_v8 = vsub.f32 %v341_v5, %v344_v7 }
 0x10f   : > { %v346_v9 = vmul.f32 1.442695, %v345_v8 }
 0x111   : > { %583 = vpow2.f32 %v346_v9 }
 0x117   : > { %v584_v10 = vpop.eup %583 }
 0x118   : > { %v348_v11 = vsel %vm312_vm0, %v584_v10, 0.0 }
 0x119   : > { %349 = vadd.xlane.f32.xlu0 %v348_v11 }
 0x18c   : > { %v350_v13 = vpop.xlane.xlu0 %349 }
 0x18d   : > { %585 = vrcp.f32 %v350_v13  ;;  %v362_v17 = vand.u32 2147483648, %v350_v13  ;;  %v360_v19 = vand.u32 2147483647, %v350_v13  ;;  %vm356_vm3 = vweird.f32 %v350_v13 }
 0x18f   : > { %v363_v21 = vor.u32 1.1754944e-38, %v362_v17  ;;  %vm361_vm5 = vcmp.eq.f32.partialorder %v360_v19, 8.507059e+37 }
 0x193   : > { %v586_v14 = vpop.eup %585 }
 0x194   : > { %v352_v15 = vmul.f32 %v586_v14, %v350_v13  ;;  %vm357_vm2 = vweird.f32 %v586_v14 }
 0x195   : > { %vm358_vm4 = vmor %vm356_vm3, %vm357_vm2 }
 0x196   : > { %v353_v16 = vsub.f32 1.0, %v352_v15 }
 0x198   : > { %v354_v18 = vmul.f32 %v586_v14, %v353_v16 }
 0x19a   : > { %v355_v20 = vadd.f32 %v586_v14, %v354_v18 }
 0x19c   : > { %v359_v22 = vsel %vm358_vm4, %v586_v14, %v355_v20 }
 0x19d   : > { %v364_v23 = vsel %vm361_vm5, %v363_v21, %v359_v22 }
 0x19e   : > { %v365_v24 = vmul.f32 %v584_v10, %v364_v23 }
 0x1a0   : > { %540 = vmatmul.msk.f32.vlgmr.msra.gmra.mxu1 %vm312_vm0, %v365_v24 }
 0x21d   : > { %v386_v25 = vpop.f32.mrf.mxu1 }
 0x21e   : > { %389 = vst.msk [vmem:[%s307_s14] sm:$0xff] %vm312_vm0, %v386_v25 }
 0x21f PF: > { %s14_s19 = sadd.s32 1, %s625_s19   ;;  %s729_s15 = smov %s617_s17 }
 0x220   : > { %p11_p7 = scmp.ge.s32.totalorder %s14_s19, 10   ;;  %s730_s16 = smov %s621_s18 }
 0x221   : > { %s731_s17 = smov %s734_s20  ;;  %s732_s18 = smov %s738_s21 }
 0x222   :  { %13 = sbr.rel (!%p11_p7) target bundleno = 3 (0x3), region = 75 }

// kernel: decoder_layer_forward.13
= control target key start
LH: loop header
LB: loop body
LE: loop exit
PB: predicated region body
PF: predicated region fallthrough
CT: control target
= control target key end

     0   :  { %vm24_vm0 = vcmask 261120   ;;  %vm54_vm1 = vcmask 523264   ;;  %s115_s1 = inlined_call_operand.vmem [shape: f32[32,64], index: 1, kind: input, shape index: {}]   ;;  %s116_s2 = inlined_call_operand.vmem [shape: f32[1,64], index: 2, kind: input, shape index: {}]   ;;  %s117_s0 = inlined_call_operand.vmem [shape: f32[16,32], index: 0, kind: input, shape index: {}]   ;;  %s118_s3 = inlined_call_operand.vmem [shape: f32[16,64], index: 3, kind: output, shape index: {}]  }
   0x1   :  { %v19_v0 = vld [vmem:[%s115_s1 + $0x18] sm:$0xff]  ;;  %v18_v1 = vld [vmem:[%s115_s1 + $0x10] sm:$0xff]  ;;  %v17_v2 = vld [vmem:[%s115_s1 + $0x8] sm:$0xff] }
   0x2   :  { %43 = vmatpush.msra.mxu0 %v19_v0  ;;  %63 = vmatpush.msra.mxu1 %v19_v0  ;;  %v16_v3 = vld [vmem:[%s115_s1] sm:$0xff]  ;;  %v15_v5 = vld [vmem:[%s117_s0 + $0x8] sm:$0xff] }
   0x3   :  { %v14_v4 = vld [vmem:[%s117_s0] sm:$0xff] }
   0x4   :  { %44 = vmatpush.msra.mxu0 %v18_v1  ;;  %64 = vmatpush.msra.mxu1 %v18_v1  ;;  %v67_v6 = vld [vmem:[%s116_s2] ss:$0 sm:$0xff] }
   0x6   :  { %45 = vmatpush.msra.mxu0 %v17_v2  ;;  %65 = vmatpush.msra.mxu1 %v17_v2 }
   0x8   :  { %46 = vmatpush.msra.mxu0 %v16_v3  ;;  %66 = vmatpush.msra.mxu1 %v16_v3 }
   0x9   :  { %61 = vmatmul.msk.f32.vlgmr.msra.gmra.mxu0 %vm24_vm0, %v14_v4  ;;  %62 = vmatmul.msk.f32.vlgmr.msra.gmra.mxu1 %vm24_vm0, %v15_v5 }
  0x86   :  { %v48_v7 = vpop.f32.mrf.mxu0  ;;  %v51_v8 = vpop.f32.mrf.mxu1 }
  0x87   :  { %v49_v9 = vadd.f32 %v67_v6, %v48_v7  ;;  %v52_v10 = vadd.f32 %v67_v6, %v51_v8 }
  0x89   :  { %55 = vst.msk [vmem:[%s118_s3] sm:$0xff] %vm54_vm1, %v49_v9 }
  0x8a   :  { %56 = vst.msk [vmem:[%s118_s3 + $0x8] sm:$0xff] %vm54_vm1, %v52_v10 }

// kernel: decoder_layer_forward.17
= control target key start
LH: loop header
LB: loop body
LE: loop exit
PB: predicated region body
PF: predicated region fallthrough
CT: control target
= control target key end

     0   :  { %s197_s0 = inlined_call_operand.vmem [shape: f32[16,64], index: 0, kind: input, shape index: {}]   ;;  %s198_s1 = inlined_call_operand.vmem [shape: f32[64,32], index: 1, kind: input, shape index: {}]   ;;  %s199_s2 = inlined_call_operand.vmem [shape: f32[1,32], index: 2, kind: input, shape index: {}]   ;;  %s200_s3 = inlined_call_operand.vmem [shape: f32[16,32], index: 3, kind: input, shape index: {}]   ;;  %s201_s4 = inlined_call_operand.hbm [shape: f32[16,32], index: 4, kind: output, shape index: {}]  }
   0x1   :  { %v27_v0 = vld [vmem:[%s198_s1 + $0x38] sm:$0xff]  ;;  %v26_v1 = vld [vmem:[%s198_s1 + $0x30] sm:$0xff]  ;;  %v25_v2 = vld [vmem:[%s198_s1 + $0x28] sm:$0xff] }
   0x2   :  { %47 = vmatpush.msra.mxu0 %v27_v0  ;;  %89 = vmatpush.msra.mxu1 %v27_v0  ;;  %v24_v3 = vld [vmem:[%s198_s1 + $0x20] sm:$0xff] }
   0x4   :  { %48 = vmatpush.msra.mxu0 %v26_v1  ;;  %90 = vmatpush.msra.mxu1 %v26_v1 }
   0x5   :  { %9 = vsyncpa [#allocation3], 0  ;;  %v23_v4 = vld [vmem:[%s198_s1 + $0x18] sm:$0xff]  ;;  %v22_v5 = vld [vmem:[%s198_s1 + $0x10] sm:$0xff]  ;;  %vm32_vm0 = vcmask 523264   ;;  %s127_s14 = smov [#allocation2]  }
   0x6   :  { %49 = vmatpush.msra.mxu0 %v25_v2  ;;  %91 = vmatpush.msra.mxu1 %v25_v2  ;;  %v21_v6 = vld [vmem:[%s198_s1 + $0x8] sm:$0xff]  ;;  %v20_v7 = vld [vmem:[%s198_s1] sm:$0xff]  ;;  %s75_s17 = sshll.u32 %s201_s4, 4  ;;  %vm66_vm1 = vcmask 261120   ;;  %s129_s18 = smov 8   ;;  %s76_s17 = int_to_ptr.hbm [resolvable:$true] %s75_s17 }
   0x7   :  { %v18_v8 = vld [vmem:[%s197_s0] sm:$0xff]  ;;  %v19_v9 = vld [vmem:[%s197_s0 + $0x8] sm:$0xff]  ;;  %s73_s0 = sshll.u32 %s127_s14, 4  ;;  %s74_s0 = int_to_ptr.vmem [resolvable:$true] %s73_s0 }
   0x8   :  { %50 = vmatpush.msra.mxu0 %v24_v3  ;;  %92 = vmatpush.msra.mxu1 %v24_v3  ;;  %v100_v10 = vld [vmem:[%s199_s2] ss:$0 sm:$0xff]  ;;  %v63_v14 = vld [vmem:[%s200_s3 + $0x8] sm:$0xff]  ;;  %s128_s2 = smov 128  }
   0x9   :  { %v62_v12 = vld [vmem:[%s200_s3] sm:$0xff] }
   0xa   :  { %51 = vmatpush.msra.mxu0 %v23_v4  ;;  %93 = vmatpush.msra.mxu1 %v23_v4 }
   0xc   :  { %52 = vmatpush.msra.mxu0 %v22_v5  ;;  %94 = vmatpush.msra.mxu1 %v22_v5 }
   0xe   :  { %53 = vmatpush.msra.mxu0 %v21_v6  ;;  %95 = vmatpush.msra.mxu1 %v21_v6 }
  0x10   :  { %54 = vmatpush.msra.mxu0 %v20_v7  ;;  %96 = vmatpush.msra.mxu1 %v20_v7 }
  0x11   :  { %87 = vmatmul.msk.f32.vlgmr.msra.gmra.mxu0 %vm32_vm0, %v18_v8  ;;  %88 = vmatmul.msk.f32.vlgmr.msra.gmra.mxu1 %vm32_vm0, %v19_v9 }
  0x8e   :  { %v56_v11 = vpop.f32.mrf.mxu0  ;;  %v59_v13 = vpop.f32.mrf.mxu1 }
  0x8f   :  { %v57_v15 = vadd.f32 %v100_v10, %v56_v11  ;;  %v60_v16 = vadd.f32 %v100_v10, %v59_v13 }
  0x91   :  { %v64_v17 = vadd.f32 %v62_v12, %v57_v15  ;;  %v65_v18 = vadd.f32 %v63_v14, %v60_v16 }
  0x93   :  { %67 = vst.msk [vmem:[#allocation2] sm:$0xff] %vm66_vm1, %v64_v17 }
  0x94   :  { %68 = vst.msk [vmem:[#allocation2 + $0x8] sm:$0xff] %vm66_vm1, %v65_v18 }
  0x95   :  { %81 = dma.vmem_to_hbm [thread:$0]  %s74_s0, 256, %s76_s17, [#allocation3], %s128_s2, %s128_s2, %s129_s18  }
  0x96   :  { %125 = dma.done.wait [#allocation3], 256  }
  0x97   :  { %126 = vsyncadd [#allocation3], 4294967040 }
  0x98   :  { %86 = vsyncpa [#allocation3], 1 }

// kernel: decoder_layer_forward.16
= control target key start
LH: loop header
LB: loop body
LE: loop exit
PB: predicated region body
PF: predicated region fallthrough
CT: control target
= control target key end

     0   :  { %vm22_vm0 = vcmask 261120   ;;  %v194_v4 = vmov 32.0   ;;  %v195_v24 = vmov 31.0   ;;  %vm164_vm15 = vcmask 523264   ;;  %s271_s0 = inlined_call_operand.vmem [shape: f32[16,32], index: 0, kind: input, shape index: {}]   ;;  %s272_s1 = inlined_call_operand.vmem [shape: f32[1,32], index: 1, kind: input, shape index: {}]   ;;  %s273_s2 = inlined_call_operand.vmem [shape: f32[1,32], index: 2, kind: input, shape index: {}]   ;;  %s274_s4 = inlined_call_operand.vmem [shape: f32[1,64], index: 4, kind: input, shape index: {}]   ;;  %s275_s3 = inlined_call_operand.vmem [shape: f32[32,64], index: 3, kind: input, shape index: {}]   ;;  %s276_s5 = inlined_call_operand.vmem [shape: f32[16,64], index: 5, kind: output, shape index: {}]  }
   0x1   :  { %v20_v0 = vld [vmem:[%s271_s0] sm:$0xff]  ;;  %v21_v2 = vld [vmem:[%s271_s0 + $0x8] sm:$0xff]  ;;  %182 = vrcp.f32 %v194_v4  ;;  %v128_v30 = vld [vmem:[%s275_s3 + $0x18] sm:$0xff] }
   0x2   :  { %v23_v1 = vsel %vm22_vm0, %v20_v0, 0.0  ;;  %v26_v3 = vsel %vm22_vm0, %v21_v2, 0.0  ;;  %v179_v12 = vld [vmem:[%s272_s1] ss:$0 sm:$0xff]  ;;  %184 = vrcp.f32 %v195_v24  ;;  %v127_v31 = vld [vmem:[%s275_s3 + $0x10] sm:$0xff]  ;;  %151 = vmatpush.msra.mxu0 %v128_v30  ;;  %173 = vmatpush.msra.mxu1 %v128_v30  ;;  %v126_v33 = vld [vmem:[%s275_s3 + $0x8] sm:$0xff] }
   0x3   :  { %24 = vadd.xlane.f32.xlu0 %v23_v1  ;;  %v125_v35 = vld [vmem:[%s275_s3] sm:$0xff] }
   0x4   :  { %152 = vmatpush.msra.mxu0 %v127_v31  ;;  %174 = vmatpush.msra.mxu1 %v127_v31 }
   0x6   :  { %153 = vmatpush.msra.mxu0 %v126_v33  ;;  %175 = vmatpush.msra.mxu1 %v126_v33 }
   0x7   :  { %v183_v5 = vpop.eup %182 }
   0x8   :  { %v30_v6 = vmul.f32 32.0, %v183_v5  ;;  %vm34_vm1 = vweird.f32 %v183_v5  ;;  %v185_v25 = vpop.eup %184  ;;  %154 = vmatpush.msra.mxu0 %v125_v35  ;;  %176 = vmatpush.msra.mxu1 %v125_v35 }
   0x9   :  { %v49_v26 = vmul.f32 31.0, %v185_v25  ;;  %vm53_vm2 = vweird.f32 %v185_v25 }
   0xa   :  { %v31_v7 = vsub.f32 1.0, %v30_v6 }
   0xb   :  { %27 = vadd.xlane.f32.xlu0 %v26_v3  ;;  %v50_v27 = vsub.f32 1.0, %v49_v26 }
   0xc   :  { %v32_v8 = vmul.f32 %v183_v5, %v31_v7  ;;  %v180_v7 = vld [vmem:[%s273_s2] ss:$0 sm:$0xff] }
   0xd   :  { %v51_v28 = vmul.f32 %v185_v25, %v50_v27 }
   0xe   :  { %v33_v9 = vadd.f32 %v183_v5, %v32_v8 }
   0xf   :  { %v52_v29 = vadd.f32 %v185_v25, %v51_v28 }
  0x10   :  { %v35_v10 = vsel %vm34_vm1, %v183_v5, %v33_v9 }
  0x11   :  { %v54_v32 = vsel %vm53_vm2, %v185_v25, %v52_v29 }
  0x76   :  { %v25_v11 = vpop.xlane.xlu0 %24 }
  0x77   :  { %v36_v13 = vmul.f32 %v35_v10, %v25_v11 }
  0x79   :  { %v38_v14 = vsub.f32 %v20_v0, %v36_v13 }
  0x7b   :  { %v237_v15 = vmul.f32 %v179_v12, %v38_v14  ;;  %v40_v16 = vmul.f32 %v38_v14, %v38_v14 }
  0x7d   :  { %v42_v17 = vsel %vm22_vm0, %v40_v16, 0.0 }
  0x7e   :  { %43 = vadd.xlane.f32.xlu1 %v42_v17  ;;  %v28_v18 = vpop.xlane.xlu0 %27 }
  0x7f   :  { %v37_v19 = vmul.f32 %v35_v10, %v28_v18 }
  0x81   :  { %v39_v20 = vsub.f32 %v21_v2, %v37_v19 }
  0x83   :  { %v240_v21 = vmul.f32 %v179_v12, %v39_v20  ;;  %v41_v22 = vmul.f32 %v39_v20, %v39_v20 }
  0x85   :  { %v45_v23 = vsel %vm22_vm0, %v41_v22, 0.0 }
  0x86   :  { %46 = vadd.xlane.f32.xlu1 %v45_v23 }
  0xf1   :  { %v44_v34 = vpop.xlane.xlu1 %43 }
  0xf2   :  { %v55_v36 = vmul.f32 %v54_v32, %v44_v34 }
  0xf4   :  { %186 = vrsqrt.f32 %v55_v36  ;;  %vm70_vm3 = vcmp.eq.f32.partialorder %v55_v36, inf  ;;  %v73_v49 = vand.u32 2147483648, %v55_v36  ;;  %vm72_vm4 = vcmp.eq.f32.partialorder %v55_v36, 0.0 }
  0xf9   :  { %v47_v37 = vpop.xlane.xlu1 %46 }
  0xfa   :  { %v187_v38 = vpop.eup %186  ;;  %v56_v39 = vmul.f32 %v54_v32, %v47_v37 }
  0xfb   :  { %v64_v40 = vmul.f32 %v187_v38, %v55_v36 }
  0xfc   :  { %188 = vrsqrt.f32 %v56_v39  ;;  %vm82_vm5 = vcmp.eq.f32.partialorder %v56_v39, inf  ;;  %v85_v57 = vand.u32 2147483648, %v56_v39  ;;  %vm84_vm6 = vcmp.eq.f32.partialorder %v56_v39, 0.0 }
  0xfd   :  { %v65_v41 = vmul.f32 %v187_v38, %v64_v40 }
  0xff   :  { %v66_v42 = vmul.f32 0.5, %v65_v41 }
 0x101   :  { %v67_v43 = vsub.f32 1.5, %v66_v42 }
 0x102   :  { %v189_v44 = vpop.eup %188 }
 0x103   :  { %v68_v45 = vmul.f32 %v187_v38, %v67_v43  ;;  %v76_v46 = vmul.f32 %v189_v44, %v56_v39 }
 0x105   :  { %v69_v47 = vmul.f32 %v68_v45, %v55_v36  ;;  %v77_v48 = vmul.f32 %v189_v44, %v76_v46 }
 0x107   :  { %v78_v50 = vmul.f32 0.5, %v77_v48  ;;  %v71_v51 = vsel %vm70_vm3, %v55_v36, %v69_v47 }
 0x108   :  { %v74_v52 = vsel %vm72_vm4, %v73_v49, %v71_v51 }
 0x109   :  { %v79_v53 = vsub.f32 1.5, %v78_v50  ;;  %v87_v54 = vadd.f32 1e-06, %v74_v52 }
 0x10b   :  { %v80_v55 = vmul.f32 %v189_v44, %v79_v53  ;;  %190 = vrcp.f32 %v87_v54  ;;  %v100_v0 = vand.u32 2147483648, %v87_v54  ;;  %v98_v2 = vand.u32 2147483647, %v87_v54 }
 0x10c   :  { %vm94_vm8 = vweird.f32 %v87_v54 }
 0x10d   :  { %v81_v56 = vmul.f32 %v80_v55, %v56_v39  ;;  %v101_v5 = vor.u32 1.1754944e-38, %v100_v0  ;;  %vm99_vm10 = vcmp.eq.f32.partialorder %v98_v2, 8.507059e+37 }
 0x10f   :  { %v83_v58 = vsel %vm82_vm5, %v56_v39, %v81_v56 }
 0x110   :  { %v86_v59 = vsel %vm84_vm6, %v85_v57, %v83_v58 }
 0x111   :  { %v191_v60 = vpop.eup %190  ;;  %v88_v61 = vadd.f32 1e-06, %v86_v59 }
 0x112   :  { %v90_v62 = vmul.f32 %v191_v60, %v87_v54  ;;  %vm95_vm7 = vweird.f32 %v191_v60 }
 0x113   :  { %192 = vrcp.f32 %v88_v61  ;;  %vm96_vm9 = vmor %vm94_vm8, %vm95_vm7  ;;  %v115_v12 = vand.u32 2147483648, %v88_v61  ;;  %v113_v16 = vand.u32 2147483647, %v88_v61  ;;  %vm109_vm12 = vweird.f32 %v88_v61 }
 0x114   :  { %v91_v63 = vsub.f32 1.0, %v90_v62 }
 0x115   :  { %v116_v18 = vor.u32 1.1754944e-38, %v115_v12  ;;  %vm114_vm14 = vcmp.eq.f32.partialorder %v113_v16, 8.507059e+37 }
 0x116   :  { %v92_v1 = vmul.f32 %v191_v60, %v91_v63 }
 0x118   :  { %v93_v3 = vadd.f32 %v191_v60, %v92_v1 }
 0x119   :  { %v193_v4 = vpop.eup %192 }
 0x11a   :  { %v97_v6 = vsel %vm96_vm9, %v191_v60, %v93_v3  ;;  %v105_v8 = vmul.f32 %v193_v4, %v88_v61  ;;  %vm110_vm11 = vweird.f32 %v193_v4 }
 0x11b   :  { %v102_v9 = vsel %vm99_vm10, %v101_v5, %v97_v6  ;;  %vm111_vm13 = vmor %vm109_vm12, %vm110_vm11 }
 0x11c   :  { %v103_v10 = vmul.f32 %v102_v9, %v237_v15  ;;  %v106_v11 = vsub.f32 1.0, %v105_v8  ;;  %v181_v15 = vld [vmem:[%s274_s4] ss:$0 sm:$0xff] }
 0x11e   :  { %v123_v13 = vadd.f32 %v180_v7, %v103_v10  ;;  %v107_v14 = vmul.f32 %v193_v4, %v106_v11 }
 0x120   :  { %171 = vmatmul.msk.f32.vlgmr.msra.gmra.mxu0 %vm22_vm0, %v123_v13  ;;  %v108_v17 = vadd.f32 %v193_v4, %v107_v14 }
 0x122   :  { %v112_v19 = vsel %vm111_vm13, %v193_v4, %v108_v17 }
 0x123   :  { %v117_v20 = vsel %vm114_vm14, %v116_v18, %v112_v19 }
 0x124   :  { %v118_v22 = vmul.f32 %v117_v20, %v240_v21 }
 0x126   :  { %v124_v23 = vadd.f32 %v180_v7, %v118_v22 }
 0x128   :  { %172 = vmatmul.msk.f32.vlgmr.msra.gmra.mxu1 %vm22_vm0, %v124_v23 }
 0x19d   :  { %v156_v24 = vpop.f32.mrf.mxu0 }
 0x19e   :  { %v157_v25 = vadd.f32 %v181_v15, %v156_v24 }
 0x1a0   :  { %v162_v26 = vmax.f32 %v157_v25, 0.0 }
 0x1a2   :  { %165 = vst.msk [vmem:[%s276_s5] sm:$0xff] %vm164_vm15, %v162_v26 }
 0x1a5   :  { %v159_v27 = vpop.f32.mrf.mxu1 }
 0x1a6   :  { %v160_v28 = vadd.f32 %v181_v15, %v159_v27 }
 0x1a8   :  { %v163_v29 = vmax.f32 %v160_v28, 0.0 }
 0x1aa   :  { %166 = vst.msk [vmem:[%s276_s5 + $0x8] sm:$0xff] %vm164_vm15, %v163_v29 }

</bundles_post_ra>
